<compile_context>
chip_gen: v7x
topology: tpu7x:2x2x1
jax: 0.10.0
libtpu: 0.0.40
codegen_flags: <defaults>
</compile_context>

<pallas_src>
import jax
import jax.numpy as jnp
from jax.experimental import pallas as pl
from jax.experimental.pallas import tpu as pltpu


_LANE_ALIGN = 256       # batch-tile alignment: multiple of 128 lanes and the 256-wide MXU
_MAX_BATCH_TILE = 2048  # per-step VMEM footprint stays ~5 MiB (f32) — fits every generation


def _round_up(x, m):
    return ((x + m - 1) // m) * m


def _choose_batch_tile(batch):
    """Largest aligned tile covering the padded batch without adding a wasted tile."""
    bp = _round_up(batch, _LANE_ALIGN)
    if bp <= _MAX_BATCH_TILE:
        return bp                                    # single grid step, minimal padding
    for tile in range(_MAX_BATCH_TILE, 0, -_LANE_ALIGN):
        if bp % tile == 0:                           # tile divides padded batch -> zero extra pad
            return tile
    return _LANE_ALIGN                               # unreachable: bp is a multiple of _LANE_ALIGN


def _make_reward_kernel(matmul_dtype):
    def kernel(st_ref, at_ref, w1st_ref, w1at_ref, b1t_ref,
               w2t_ref, b2t_ref, w3t_ref, b3_ref, o_ref):
        # Shapes (feature-major, batch on the lane axis):
        #   st_ref (ds, tb)   at_ref (da, tb)
        #   w1st_ref (H1, ds) w1at_ref (H1, da) b1t_ref (H1, 1)
        #   w2t_ref (H2, H1)  b2t_ref (H2, 1)   w3t_ref (1, H2)  b3_ref (1,) in SMEM
        ds = st_ref.shape[0]
        da = at_ref.shape[0]

        # ---- Layer 1 on the VPU (K = state_dim + action_dim = 4; keep it off
        # the MXU).  h1^T[h, b] = b1[h] + sum_f W1[f, h] * x[f, b], computed as
        # rank-1 broadcast multiply-adds; the concat is fused via the W1 split.
        acc1 = b1t_ref[...] + w1st_ref[:, 0:1] * st_ref[0:1, :]
        for f in range(1, ds):
            acc1 = acc1 + w1st_ref[:, f:f + 1] * st_ref[f:f + 1, :]
        for f in range(da):
            acc1 = acc1 + w1at_ref[:, f:f + 1] * at_ref[f:f + 1, :]
        h1t = jnp.maximum(acc1, 0.0)                                    # (H1, tb)

        # ---- Layer 2 on the MXU: (H2, H1) @ (H1, tb) -> (H2, tb), f32 accumulate.
        h2t = jnp.dot(w2t_ref[...].astype(matmul_dtype), h1t.astype(matmul_dtype),
                      preferred_element_type=jnp.float32) + b2t_ref[...]
        h2t = jnp.maximum(h2t, 0.0)                                     # (H2, tb)

        # ---- Layer 3: (1, H2) @ (H2, tb) -> lane-dense (1, tb) reward row.
        r = jnp.dot(w3t_ref[...].astype(matmul_dtype), h2t.astype(matmul_dtype),
                    preferred_element_type=jnp.float32)
        o_ref[...] = (r + b3_ref[0]).astype(o_ref.dtype)

    return kernel


def reward_network_forward(state, action, params, *, batch_tile=None,
                           matmul_dtype=jnp.float32):
    """Pallas forward pass of RewardNetwork.

    state:  (B, state_dim)  float32
    action: (B, action_dim) float32
    params: w1 (state_dim+action_dim, 256), b1 (1, 256),
            w2 (256, 128), b2 (1, 128), w3 (128, 1), b3 (1, 1)
    returns (B, 1) float32
    """
    state = jnp.asarray(state, jnp.float32)
    action = jnp.asarray(action, jnp.float32)
    B, ds = state.shape
    ba, da = action.shape
    assert ba == B, "state/action batch mismatch"

    w1, b1 = params["w1"], params["b1"]
    w2, b2 = params["w2"], params["b2"]
    w3, b3 = params["w3"], params["b3"]
    H1, H2 = w1.shape[1], w2.shape[1]

    # Feature-major weights/biases (batch lives on the lane axis everywhere).
    w1st = w1[:ds].T                      # (H1, ds) — concat fused via row-split
    w1at = w1[ds:].T                      # (H1, da)
    b1t = b1.reshape(H1, 1)
    w2t = w2.T                            # (H2, H1)
    b2t = b2.reshape(H2, 1)
    w3t = w3.T                            # (1, H2)
    b3s = b3.reshape((1,))                # single scalar -> SMEM

    # Batch-on-lanes inputs: (features, B).  The (B,2)->(2,B) transpose is
    # 8 bytes/row of HBM traffic and buys a ~16x denser lane layout in VMEM.
    st = state.T
    at = action.T

    if batch_tile is None:
        batch_tile = _choose_batch_tile(B)
    else:
        batch_tile = _round_up(int(batch_tile), 128)
    bp = _round_up(B, batch_tile)
    if bp != B:
        pad = bp - B
        st = jnp.pad(st, ((0, 0), (0, pad)))
        at = jnp.pad(at, ((0, 0), (0, pad)))
    grid = (bp // batch_tile,)

    out_row = pl.pallas_call(
        _make_reward_kernel(matmul_dtype),
        out_shape=jax.ShapeDtypeStruct((1, bp), jnp.float32),
        grid_spec=pltpu.PrefetchScalarGridSpec(
            num_scalar_prefetch=0,
            grid=grid,
            in_specs=[
                pl.BlockSpec((ds, batch_tile), lambda i: (0, i)),   # state^T tile
                pl.BlockSpec((da, batch_tile), lambda i: (0, i)),   # action^T tile
                pl.BlockSpec((H1, ds), lambda i: (0, 0)),           # W1[:ds]^T (resident)
                pl.BlockSpec((H1, da), lambda i: (0, 0)),           # W1[ds:]^T (resident)
                pl.BlockSpec((H1, 1), lambda i: (0, 0)),            # b1^T
                pl.BlockSpec((H2, H1), lambda i: (0, 0)),           # W2^T
                pl.BlockSpec((H2, 1), lambda i: (0, 0)),            # b2^T
                pl.BlockSpec((1, H2), lambda i: (0, 0)),            # W3^T
                pl.BlockSpec(memory_space=pltpu.MemorySpace.SMEM),  # b3 scalar
            ],
            # Lane-dense output: batch on the lane axis, one (1, tile) row per step.
            out_specs=pl.BlockSpec((1, batch_tile), lambda i: (0, i)),
        ),
        compiler_params=pltpu.CompilerParams(
            dimension_semantics=("parallel",),
            vmem_limit_bytes=16 * 1024 * 1024,
        ),
    )(st, at, w1st, w1at, b1t, w2t, b2t, w3t, b3s)

    # (1, bp) lane-dense row -> (B, 1) column expected by callers.
    return out_row[0, :B].reshape(B, 1)


def init_reward_network_params(key, state_dim=2, action_dim=2):
    """Deterministic init mimicking nn.Linear's U(-1/sqrt(fan_in), +1/sqrt(fan_in))."""
    d_in = state_dim + action_dim
    dims = [(d_in, 256), (256, 128), (128, 1)]
    params = {}
    for idx, (fan_in, fan_out) in enumerate(dims, start=1):
        key, kw, kb = jax.random.split(key, 3)
        bound = 1.0 / (fan_in ** 0.5)
        params[f"w{idx}"] = jax.random.uniform(
            kw, (fan_in, fan_out), jnp.float32, -bound, bound)
        params[f"b{idx}"] = jax.random.uniform(
            kb, (1, fan_out), jnp.float32, -bound, bound)
    return params


def _reference(state, action, params):
    # HIGHEST precision so the f32-accumulating kernel is compared against a
    # genuinely f32-accurate reference (default TPU matmul precision is bf16).
    hp = jax.lax.Precision.HIGHEST
    x = jnp.concatenate([state, action], axis=-1)
    h1 = jnp.maximum(jnp.dot(x, params["w1"], precision=hp) + params["b1"], 0.0)
    h2 = jnp.maximum(jnp.dot(h1, params["w2"], precision=hp) + params["b2"], 0.0)
    return jnp.dot(h2, params["w3"], precision=hp) + params["b3"]


if __name__ == "__main__":
    key = jax.random.PRNGKey(0)
    k_params, k_s1, k_a1, k_s2, k_a2 = jax.random.split(key, 5)

    state_dim, action_dim = 2, 2
    params = init_reward_network_params(k_params, state_dim, action_dim)

    # Small batch (padded 8 -> 256, single grid step).
    batch = 8
    state = jax.random.normal(k_s1, (batch, state_dim), jnp.float32)
    action = jax.random.normal(k_a1, (batch, action_dim), jnp.float32)
    out = jax.block_until_ready(reward_network_forward(state, action, params))
    assert out.shape == (batch, 1), out.shape
    ref = _reference(state, action, params)
    assert jnp.allclose(out, ref, atol=2e-5, rtol=2e-5), \
        float(jnp.max(jnp.abs(out - ref)))

    # Non-aligned batch, default tiling (single 512-row step, zero wasted tiles).
    batch2 = 300
    state2 = jax.random.normal(k_s2, (batch2, state_dim), jnp.float32)
    action2 = jax.random.normal(k_a2, (batch2, action_dim), jnp.float32)
    out2 = jax.block_until_ready(reward_network_forward(state2, action2, params))
    assert out2.shape == (batch2, 1), out2.shape
    ref2 = _reference(state2, action2, params)
    assert jnp.allclose(out2, ref2, atol=2e-5, rtol=2e-5)

    # Explicit 2-step grid (batch_tile=256) to exercise the multi-tile pipeline.
    out3 = jax.block_until_ready(
        reward_network_forward(state2, action2, params, batch_tile=256))
    assert jnp.allclose(out3, ref2, atol=2e-5, rtol=2e-5)

    print("KERNEL_OK")
</pallas_src>

<mosaic_0001>
module attributes {stable_mosaic.version = 11 : i64} {
  func.func @kernel(%arg0: i32, %arg1: memref<2x256xf32, #tpu.memory_space<vmem>>, %arg2: memref<2x256xf32, #tpu.memory_space<vmem>>, %arg3: memref<256x2xf32, #tpu.memory_space<vmem>>, %arg4: memref<256x2xf32, #tpu.memory_space<vmem>>, %arg5: memref<256x1xf32, #tpu.memory_space<vmem>>, %arg6: memref<128x256xf32, #tpu.memory_space<vmem>>, %arg7: memref<128x1xf32, #tpu.memory_space<vmem>>, %arg8: memref<1x128xf32, #tpu.memory_space<vmem>>, %arg9: memref<1xf32, #tpu.memory_space<smem>>, %arg10: memref<1x256xf32, #tpu.memory_space<vmem>>) attributes {dimension_semantics = [#tpu.dimension_semantics<parallel>], iteration_bounds = array<i64: 1>, scalar_prefetch = 0 : i64, scratch_operands = 0 : i64, tpu.core_type = #tpu.core_type<tc>, window_params = [{transform_indices = @transform_0, window_bounds = array<i64: 2, 256>}, {transform_indices = @transform_1, window_bounds = array<i64: 2, 256>}, {pipeline_mode = #tpu.pipeline_mode<synchronous>, transform_indices = @transform_2, window_bounds = array<i64: 256, 2>}, {pipeline_mode = #tpu.pipeline_mode<synchronous>, transform_indices = @transform_3, window_bounds = array<i64: 256, 2>}, {pipeline_mode = #tpu.pipeline_mode<synchronous>, transform_indices = @transform_4, window_bounds = array<i64: 256, 1>}, {pipeline_mode = #tpu.pipeline_mode<synchronous>, transform_indices = @transform_5, window_bounds = array<i64: 128, 256>}, {pipeline_mode = #tpu.pipeline_mode<synchronous>, transform_indices = @transform_6, window_bounds = array<i64: 128, 1>}, {pipeline_mode = #tpu.pipeline_mode<synchronous>, transform_indices = @transform_7, window_bounds = array<i64: 1, 128>}, {transform_indices = @transform_8, window_bounds = array<i64: 1>}, {transform_indices = @transform_9, window_bounds = array<i64: 1, 256>}]} {
    %c0 = arith.constant 0 : index
    %c0_0 = arith.constant 0 : index
    %0 = vector.load %arg5[%c0, %c0_0] : memref<256x1xf32, #tpu.memory_space<vmem>>, vector<256x1xf32>
    %c0_1 = arith.constant 0 : index
    %c0_2 = arith.constant 0 : index
    %1 = vector.load %arg3[%c0_1, %c0_2] : memref<256x2xf32, #tpu.memory_space<vmem>>, vector<256x1xf32>
    %c0_3 = arith.constant 0 : index
    %c0_4 = arith.constant 0 : index
    %2 = vector.load %arg1[%c0_3, %c0_4] : memref<2x256xf32, #tpu.memory_space<vmem>>, vector<1x256xf32>
    %3 = vector.broadcast %1 : vector<256x1xf32> to vector<256x256xf32>
    %4 = vector.broadcast %2 : vector<1x256xf32> to vector<256x256xf32>
    %5 = arith.mulf %3, %4 : vector<256x256xf32>
    %6 = vector.broadcast %0 : vector<256x1xf32> to vector<256x256xf32>
    %7 = arith.addf %6, %5 : vector<256x256xf32>
    %c0_5 = arith.constant 0 : index
    %c1 = arith.constant 1 : index
    %8 = vector.load %arg3[%c0_5, %c1] : memref<256x2xf32, #tpu.memory_space<vmem>>, vector<256x1xf32>
    %c1_6 = arith.constant 1 : index
    %c0_7 = arith.constant 0 : index
    %9 = vector.load %arg1[%c1_6, %c0_7] : memref<2x256xf32, #tpu.memory_space<vmem>>, vector<1x256xf32>
    %10 = vector.broadcast %8 : vector<256x1xf32> to vector<256x256xf32>
    %11 = vector.broadcast %9 : vector<1x256xf32> to vector<256x256xf32>
    %12 = arith.mulf %10, %11 : vector<256x256xf32>
    %13 = arith.addf %7, %12 : vector<256x256xf32>
    %c0_8 = arith.constant 0 : index
    %c0_9 = arith.constant 0 : index
    %14 = vector.load %arg4[%c0_8, %c0_9] : memref<256x2xf32, #tpu.memory_space<vmem>>, vector<256x1xf32>
    %c0_10 = arith.constant 0 : index
    %c0_11 = arith.constant 0 : index
    %15 = vector.load %arg2[%c0_10, %c0_11] : memref<2x256xf32, #tpu.memory_space<vmem>>, vector<1x256xf32>
    %16 = vector.broadcast %14 : vector<256x1xf32> to vector<256x256xf32>
    %17 = vector.broadcast %15 : vector<1x256xf32> to vector<256x256xf32>
    %18 = arith.mulf %16, %17 : vector<256x256xf32>
    %19 = arith.addf %13, %18 : vector<256x256xf32>
    %c0_12 = arith.constant 0 : index
    %c1_13 = arith.constant 1 : index
    %20 = vector.load %arg4[%c0_12, %c1_13] : memref<256x2xf32, #tpu.memory_space<vmem>>, vector<256x1xf32>
    %c1_14 = arith.constant 1 : index
    %c0_15 = arith.constant 0 : index
    %21 = vector.load %arg2[%c1_14, %c0_15] : memref<2x256xf32, #tpu.memory_space<vmem>>, vector<1x256xf32>
    %22 = vector.broadcast %20 : vector<256x1xf32> to vector<256x256xf32>
    %23 = vector.broadcast %21 : vector<1x256xf32> to vector<256x256xf32>
    %24 = arith.mulf %22, %23 : vector<256x256xf32>
    %25 = arith.addf %19, %24 : vector<256x256xf32>
    %cst = arith.constant 0.000000e+00 : f32
    %26 = vector.broadcast %cst : f32 to vector<256x256xf32>
    %27 = arith.maximumf %25, %26 : vector<256x256xf32>
    %c0_16 = arith.constant 0 : index
    %c0_17 = arith.constant 0 : index
    %28 = vector.load %arg6[%c0_16, %c0_17] : memref<128x256xf32, #tpu.memory_space<vmem>>, vector<128x256xf32>
    %cst_18 = arith.constant dense<0.000000e+00> : vector<128x256xf32>
    %29 = tpu.matmul %28, %27, %cst_18 {dimension_numbers = #tpu.dot_dimension_numbers<[1], [0], [0], [1], [0, 0, 1, 1], [], []>} : vector<128x256xf32>, vector<256x256xf32>, vector<128x256xf32> -> vector<128x256xf32>
    %c0_19 = arith.constant 0 : index
    %c0_20 = arith.constant 0 : index
    %30 = vector.load %arg7[%c0_19, %c0_20] : memref<128x1xf32, #tpu.memory_space<vmem>>, vector<128x1xf32>
    %31 = vector.broadcast %30 : vector<128x1xf32> to vector<128x256xf32>
    %32 = arith.addf %29, %31 : vector<128x256xf32>
    %cst_21 = arith.constant 0.000000e+00 : f32
    %33 = vector.broadcast %cst_21 : f32 to vector<128x256xf32>
    %34 = arith.maximumf %32, %33 : vector<128x256xf32>
    %c0_22 = arith.constant 0 : index
    %c0_23 = arith.constant 0 : index
    %35 = vector.load %arg8[%c0_22, %c0_23] : memref<1x128xf32, #tpu.memory_space<vmem>>, vector<1x128xf32>
    %cst_24 = arith.constant dense<0.000000e+00> : vector<1x256xf32>
    %36 = tpu.matmul %35, %34, %cst_24 {dimension_numbers = #tpu.dot_dimension_numbers<[1], [0], [0], [1], [0, 0, 1, 1], [], []>} : vector<1x128xf32>, vector<128x256xf32>, vector<1x256xf32> -> vector<1x256xf32>
    %c0_25 = arith.constant 0 : index
    %37 = memref.load %arg9[%c0_25] : memref<1xf32, #tpu.memory_space<smem>>
    %38 = vector.broadcast %37 : f32 to vector<1x256xf32>
    %39 = arith.addf %36, %38 : vector<1x256xf32>
    %c0_26 = arith.constant 0 : index
    %c0_27 = arith.constant 0 : index
    %40 = vector.load %arg10[%c0_26, %c0_27] : memref<1x256xf32, #tpu.memory_space<vmem>>, vector<1x256xf32>
    tpu.vector_store %arg10[%c0_26, %c0_27], %39 {strides = array<i32>} : memref<1x256xf32, #tpu.memory_space<vmem>>, vector<1x256xf32>,
    return
  }
  func.func @transform_0(%arg0: i32) -> (i32, i32) {
    %c0_i32 = arith.constant 0 : i32
    %c0_i32_0 = arith.constant 0 : i32
    return %c0_i32, %arg0 : i32, i32
  }
  func.func @transform_1(%arg0: i32) -> (i32, i32) {
    %c0_i32 = arith.constant 0 : i32
    %c0_i32_0 = arith.constant 0 : i32
    return %c0_i32, %arg0 : i32, i32
  }
  func.func @transform_2(%arg0: i32) -> (i32, i32) {
    %c0_i32 = arith.constant 0 : i32
    %c0_i32_0 = arith.constant 0 : i32
    %c0_i32_1 = arith.constant 0 : i32
    return %c0_i32, %c0_i32_0 : i32, i32
  }
  func.func @transform_3(%arg0: i32) -> (i32, i32) {
    %c0_i32 = arith.constant 0 : i32
    %c0_i32_0 = arith.constant 0 : i32
    %c0_i32_1 = arith.constant 0 : i32
    return %c0_i32, %c0_i32_0 : i32, i32
  }
  func.func @transform_4(%arg0: i32) -> (i32, i32) {
    %c0_i32 = arith.constant 0 : i32
    %c0_i32_0 = arith.constant 0 : i32
    %c0_i32_1 = arith.constant 0 : i32
    return %c0_i32, %c0_i32_0 : i32, i32
  }
  func.func @transform_5(%arg0: i32) -> (i32, i32) {
    %c0_i32 = arith.constant 0 : i32
    %c0_i32_0 = arith.constant 0 : i32
    %c0_i32_1 = arith.constant 0 : i32
    return %c0_i32, %c0_i32_0 : i32, i32
  }
  func.func @transform_6(%arg0: i32) -> (i32, i32) {
    %c0_i32 = arith.constant 0 : i32
    %c0_i32_0 = arith.constant 0 : i32
    %c0_i32_1 = arith.constant 0 : i32
    return %c0_i32, %c0_i32_0 : i32, i32
  }
  func.func @transform_7(%arg0: i32) -> (i32, i32) {
    %c0_i32 = arith.constant 0 : i32
    %c0_i32_0 = arith.constant 0 : i32
    %c0_i32_1 = arith.constant 0 : i32
    return %c0_i32, %c0_i32_0 : i32, i32
  }
  func.func @transform_8(%arg0: i32) -> i32 {
    %c0_i32 = arith.constant 0 : i32
    %c0_i32_0 = arith.constant 0 : i32
    return %c0_i32 : i32
  }
  func.func @transform_9(%arg0: i32) -> (i32, i32) {
    %c0_i32 = arith.constant 0 : i32
    %c0_i32_0 = arith.constant 0 : i32
    return %c0_i32, %arg0 : i32, i32
  }
}

</mosaic_0001>

<bundles_post_ra>
// kernel: tpu_custom_call.1
= control target key start
LH: loop header
LB: loop body
LE: loop exit
PB: predicated region body
PF: predicated region fallthrough
CT: control target
= control target key end

     0   :  { %v3459_v2 = vmov 1   ;;  %v3457_v3 = vmov 0   ;;  %s3447_s0 = inlined_call_operand.vmem [shape: f32[2,256], index: 0, kind: input, shape index: {}]   ;;  %s3448_s1 = inlined_call_operand.vmem [shape: f32[2,256], index: 1, kind: input, shape index: {}]   ;;  %s3449_s2 = inlined_call_operand.vmem [shape: f32[256,2], index: 2, kind: input, shape index: {}]   ;;  %s3450_s3 = inlined_call_operand.vmem [shape: f32[256,2], index: 3, kind: input, shape index: {}]   ;;  %s3451_s4 = inlined_call_operand.vmem [shape: f32[256,1], index: 4, kind: input, shape index: {}]   ;;  %s3452_s5 = inlined_call_operand.vmem [shape: f32[128,256], index: 5, kind: input, shape index: {}]   ;;  %s3453_s6 = inlined_call_operand.vmem [shape: f32[128,1], index: 6, kind: input, shape index: {}]   ;;  %s3454_s7 = inlined_call_operand.vmem [shape: f32[1,128], index: 7, kind: input, shape index: {}]   ;;  %s3455_s8 = inlined_call_operand.<no memory space> [shape: f32[1], index: 8, kind: input, shape index: {}]   ;;  %s3456_s9 = inlined_call_operand.hbm [shape: f32[1,256], index: 9, kind: output, shape index: {}]  }
   0x1   :  { %v68_v0 = vld [vmem:[%s3449_s2 + $0x10] sm:$0xff]  ;;  %v2159_v1 = vld [vmem:[%s3449_s2 + $0x8] sm:$0xff]  ;;  %2029 = vset.pattern.permute.xlu0 %v3459_v2  ;;  %2027 = vset.pattern.permute.xlu1 %v3457_v3  ;;  %v69_v4 = vld [vmem:[%s3449_s2 + $0x18] sm:$0xff] }
   0x2   :  { %111 = vperm.xlu1 %2027, %v68_v0   ;;  %565 = vperm.xlu0 %2029, %v2159_v1   ;;  %v71_v5 = vld [vmem:[%s3449_s2 + $0x28] sm:$0xff]  ;;  %v73_v6 = vld [vmem:[%s3449_s2 + $0x38] sm:$0xff] }
   0x3   :  { %v75_v7 = vld [vmem:[%s3449_s2 + $0x48] sm:$0xff] }
   0x6   :  { %116 = vperm.xlu1 %2027, %v69_v4   ;;  %573 = vperm.xlu0 %2029, %v69_v4  }
   0xa   :  { %126 = vperm.xlu1 %2027, %v71_v5   ;;  %581 = vperm.xlu0 %2029, %v71_v5  }
   0xe   :  { %136 = vperm.xlu1 %2027, %v73_v6   ;;  %589 = vperm.xlu0 %2029, %v73_v6  }
   0xf   :  { %15 = vsyncpa [#allocation4], 0  ;;  %v77_v8 = vld [vmem:[%s3449_s2 + $0x58] sm:$0xff]  ;;  %v79_v9 = vld [vmem:[%s3449_s2 + $0x68] sm:$0xff]  ;;  %s2102_s28 = smov [#allocation3]  }
  0x10   :  { %v2185_v10 = vld [vmem:[%s3449_s2 + $0x70] sm:$0xff]  ;;  %v34_v11 = vld [vmem:[%s3451_s4] sm:$0xff]  ;;  %v2194_v12 = vld [vmem:[%s3450_s3 + $0x68] sm:$0xff]  ;;  %s1916_s29 = sshll.u32 %s2102_s28, 4  ;;  %s1917_s29 = int_to_ptr.vmem [resolvable:$true] %s1916_s29 }
  0x11   :  { %v2199_v13 = vld [vmem:[%s3449_s2] sm:$0xff]  ;;  %v2217_v16 = vld [vmem:[%s3450_s3 + $0x78] sm:$0xff]  ;;  %v828_v17 = vld [vmem:[%s3450_s3 + $0x8] sm:$0xff]  ;;  %p2079_p1 = scmp.lt.s32.totalorder %s1917_s29, %s1917_s29 }
  0x12   :  { %146 = vperm.xlu1 %2027, %v75_v7   ;;  %597 = vperm.xlu0 %2029, %v75_v7   ;;  %v2207_v14 = vld [vmem:[%s3449_s2 + $0x80] sm:$0xff]  ;;  %v2226_v18 = vld [vmem:[%s3449_s2 + $0x90] sm:$0xff]  ;;  %v37_v19 = vld [vmem:[%s3451_s4 + $0x18] sm:$0xff] }
  0x13   :  { %v827_v15 = vld [vmem:[%s3450_s3] sm:$0xff]  ;;  %v2235_v20 = vld [vmem:[%s3450_s3 + $0x88] sm:$0xff]  ;;  %v2248_v22 = vld [vmem:[%s3450_s3 + $0x98] sm:$0xff] }
  0x14   :  { %v2241_v21 = vld [vmem:[%s3449_s2 + $0xa0] sm:$0xff]  ;;  %v2254_v23 = vld [vmem:[%s3449_s2 + $0xb0] sm:$0xff]  ;;  %v2260_v24 = vld [vmem:[%s3450_s3 + $0xa8] sm:$0xff] }
  0x15   :  { %3496 = vst [vmem:[#allocation6_spill] sm:$0xff] %v2260_v24  ;;  %v830_v25 = vld [vmem:[%s3450_s3 + $0x18] sm:$0xff]  ;;  %v90_v26 = vld [vmem:[%s3449_s2 + $0xc0] sm:$0xff]  ;;  %v92_v30 = vld [vmem:[%s3449_s2 + $0xd0] sm:$0xff] }
  0x16   :  { %156 = vperm.xlu1 %2027, %v77_v8   ;;  %605 = vperm.xlu0 %2029, %v77_v8   ;;  %v38_v27 = vld [vmem:[%s3451_s4 + $0x20] sm:$0xff]  ;;  %v850_v28 = vld [vmem:[%s3450_s3 + $0xb8] sm:$0xff]  ;;  %v2286_v31 = vld [vmem:[%s3450_s3 + $0x10] sm:$0xff] }
  0x17   :  { %v70_v29 = vld [vmem:[%s3449_s2 + $0x20] sm:$0xff]  ;;  %v852_v32 = vld [vmem:[%s3450_s3 + $0xc8] sm:$0xff]  ;;  %v854_v35 = vld [vmem:[%s3450_s3 + $0xd8] sm:$0xff] }
  0x18   :  { %v94_v33 = vld [vmem:[%s3449_s2 + $0xe0] sm:$0xff]  ;;  %v832_v34 = vld [vmem:[%s3450_s3 + $0x28] sm:$0xff]  ;;  %v40_v36 = vld [vmem:[%s3451_s4 + $0x30] sm:$0xff] }
  0x19   :  { %v96_v37 = vld [vmem:[%s3449_s2 + $0xf0] sm:$0xff]  ;;  %v856_v39 = vld [vmem:[%s3450_s3 + $0xe8] sm:$0xff]  ;;  %v831_v40 = vld [vmem:[%s3450_s3 + $0x20] sm:$0xff] }
  0x1a   :  { %166 = vperm.xlu1 %2027, %v79_v9   ;;  %613 = vperm.xlu0 %2029, %v79_v9   ;;  %v72_v38 = vld [vmem:[%s3449_s2 + $0x30] sm:$0xff]  ;;  %v834_v41 = vld [vmem:[%s3450_s3 + $0x38] sm:$0xff]  ;;  %v42_v42 = vld [vmem:[%s3451_s4 + $0x40] sm:$0xff] }
  0x1b   :  { %v74_v43 = vld [vmem:[%s3449_s2 + $0x40] sm:$0xff]  ;;  %v76_v44 = vld [vmem:[%s3449_s2 + $0x50] sm:$0xff]  ;;  %v836_v49 = vld [vmem:[%s3450_s3 + $0x48] sm:$0xff] }
  0x1c   :  { %v833_v45 = vld [vmem:[%s3450_s3 + $0x30] sm:$0xff]  ;;  %v78_v46 = vld [vmem:[%s3449_s2 + $0x60] sm:$0xff]  ;;  %v35_v50 = vld [vmem:[%s3451_s4 + $0x8] sm:$0xff] }
  0x1d   :  { %v44_v53 = vld [vmem:[%s3451_s4 + $0x50] sm:$0xff]  ;;  %v835_v59 = vld [vmem:[%s3450_s3 + $0x40] sm:$0xff]  ;;  %v39_v60 = vld [vmem:[%s3451_s4 + $0x28] sm:$0xff] }
  0x1e   :  { %617 = vperm.xlu0 %2029, %v2185_v10   ;;  %336 = vperm.xlu1 %2027, %v34_v11   ;;  %v36_v54 = vld [vmem:[%s3451_s4 + $0x10] sm:$0xff]  ;;  %v41_v4 = vld [vmem:[%s3451_s4 + $0x38] sm:$0xff]  ;;  %v46_v7 = vld [vmem:[%s3451_s4 + $0x60] sm:$0xff] }
  0x22   :  { %1214 = vperm.xlu0 %2029, %v2194_v12   ;;  %2028 = vset.pattern.permute.xlu1 %v3459_v2 }
  0x23   :  { %561 = vperm.xlu1 %2028, %v2199_v13  }
  0x26   :  { %625 = vperm.xlu0 %2029, %v2207_v14  }
  0x27   :  { %2030 = vset.pattern.permute.xlu1 %v3457_v3 }
  0x28   :  { %862 = vperm.xlu1 %2030, %v827_v15  }
  0x2a   :  { %1222 = vperm.xlu0 %2029, %v2217_v16  }
  0x2c   :  { %867 = vperm.xlu1 %2030, %v828_v17  }
  0x2e   :  { %633 = vperm.xlu0 %2029, %v2226_v18  }
  0x30   :  { %351 = vperm.xlu1 %2030, %v37_v19  }
  0x32   :  { %1230 = vperm.xlu0 %2029, %v2235_v20  }
  0x34   :  { %2031 = vset.pattern.permute.xlu1 %v3459_v2 }
  0x35   :  { %569 = vperm.xlu1 %2031, %v68_v0  }
  0x36   :  { %641 = vperm.xlu0 %2029, %v2241_v21  }
  0x39   :  { %1162 = vperm.xlu1 %2031, %v827_v15   ;;  %v837_v15 = vld [vmem:[%s3450_s3 + $0x50] sm:$0xff] }
  0x3a   :  { %1238 = vperm.xlu0 %2029, %v2248_v22  }
  0x3d   :  { %1166 = vperm.xlu1 %2031, %v828_v17  }
  0x3e   :  { %649 = vperm.xlu0 %2029, %v2254_v23  }
  0x41   :  { %2032 = vset.pattern.permute.xlu1 %v3457_v3 }
  0x42   :  { %1246 = vperm.xlu0 %2029, %v2260_v24   ;;  %877 = vperm.xlu1 %2032, %v830_v25  }
  0x46   :  { %657 = vperm.xlu0 %2029, %v90_v26   ;;  %356 = vperm.xlu1 %2032, %v38_v27  }
  0x4a   :  { %1254 = vperm.xlu0 %2029, %v850_v28   ;;  %2033 = vset.pattern.permute.xlu1 %v3459_v2 }
  0x4b   :  { %577 = vperm.xlu1 %2033, %v70_v29  }
  0x4e   :  { %665 = vperm.xlu0 %2029, %v92_v30  }
  0x4f   :  { %1170 = vperm.xlu1 %2033, %v2286_v31  }
  0x52   :  { %1262 = vperm.xlu0 %2029, %v852_v32  }
  0x53   :  { %1174 = vperm.xlu1 %2033, %v830_v25   ;;  %v45_v25 = vld [vmem:[%s3451_s4 + $0x58] sm:$0xff] }
  0x56   :  { %673 = vperm.xlu0 %2029, %v94_v33  }
  0x57   :  { %2034 = vset.pattern.permute.xlu1 %v3457_v3 }
  0x58   :  { %887 = vperm.xlu1 %2034, %v832_v34  }
  0x5a   :  { %1270 = vperm.xlu0 %2029, %v854_v35  }
  0x5c   :  { %366 = vperm.xlu1 %2034, %v40_v36   ;;  %v49_v36 = vld [vmem:[%s3451_s4 + $0x78] sm:$0xff] }
  0x5e   :  { %681 = vperm.xlu0 %2029, %v96_v37  }
  0x60   :  { %2035 = vset.pattern.permute.xlu1 %v3459_v2 }
  0x61   :  { %585 = vperm.xlu1 %2035, %v72_v38  }
  0x62   :  { %1278 = vperm.xlu0 %2029, %v856_v39  }
  0x65   :  { %1178 = vperm.xlu1 %2035, %v831_v40  }
  0x66   :  { %2060 = vset.pattern.permute.xlu0 %v3457_v3 }
  0x67   :  { %101 = vperm.xlu0 %2060, %v2199_v13  }
  0x69   :  { %1182 = vperm.xlu1 %2035, %v832_v34   ;;  %v81_v34 = vld [vmem:[%s3449_s2 + $0x78] sm:$0xff] }
  0x6b   :  { %106 = vperm.xlu0 %2060, %v2159_v1   ;;  %v838_v1 = vld [vmem:[%s3450_s3 + $0x58] sm:$0xff] }
  0x6d   :  { %2036 = vset.pattern.permute.xlu1 %v3457_v3 }
  0x6e   :  { %897 = vperm.xlu1 %2036, %v834_v41  }
  0x6f   :  { %121 = vperm.xlu0 %2060, %v70_v29   ;;  %v839_v29 = vld [vmem:[%s3450_s3 + $0x60] sm:$0xff] }
  0x72   :  { %376 = vperm.xlu1 %2036, %v42_v42   ;;  %v50_v42 = vld [vmem:[%s3451_s4 + $0x80] sm:$0xff] }
  0x73   :  { %131 = vperm.xlu0 %2060, %v72_v38  }
  0x76   :  { %2037 = vset.pattern.permute.xlu1 %v3459_v2 }
  0x77   :  { %141 = vperm.xlu0 %2060, %v74_v43   ;;  %593 = vperm.xlu1 %2037, %v74_v43  }
  0x7b   :  { %151 = vperm.xlu0 %2060, %v76_v44   ;;  %1186 = vperm.xlu1 %2037, %v833_v45  }
  0x7f   :  { %161 = vperm.xlu0 %2060, %v78_v46   ;;  %1190 = vperm.xlu1 %2037, %v834_v41  }
  0x81   :  { %v2341_v47 = vpop.permute.xlu1 %111  ;;  %v2343_v48 = vpop.permute.xlu0 %565 }
  0x83   :  { %171 = vperm.xlu0 %2060, %v2185_v10   ;;  %2038 = vset.pattern.permute.xlu1 %v3457_v3  ;;  %v43_v10 = vld [vmem:[%s3451_s4 + $0x48] sm:$0xff] }
  0x84   :  { %907 = vperm.xlu1 %2038, %v836_v49  }
  0x85   :  { %v2353_v51 = vpop.permute.xlu1 %116  ;;  %v2355_v52 = vpop.permute.xlu0 %573 }
  0x87   :  { %341 = vperm.xlu0 %2060, %v35_v50   ;;  %v841_v50 = vld [vmem:[%s3450_s3 + $0x70] sm:$0xff] }
  0x88   :  { %386 = vperm.xlu1 %2038, %v44_v53   ;;  %v52_v53 = vld [vmem:[%s3451_s4 + $0x90] sm:$0xff] }
  0x89   :  { %v2363_v55 = vpop.permute.xlu1 %126  ;;  %v2365_v56 = vpop.permute.xlu0 %581 }
  0x8b   :  { %346 = vperm.xlu0 %2060, %v36_v54  }
  0x8c   :  { %2039 = vset.pattern.permute.xlu1 %v3459_v2 }
  0x8d   :  { %v2368_v57 = vpop.permute.xlu1 %136  ;;  %601 = vperm.xlu1 %2039, %v76_v44   ;;  %v2370_v58 = vpop.permute.xlu0 %589 }
  0x8f   :  { %872 = vperm.xlu0 %2060, %v2286_v31   ;;  %v47_v31 = vld [vmem:[%s3451_s4 + $0x68] sm:$0xff] }
  0x91   :  { %v2379_v61 = vpop.permute.xlu1 %146  ;;  %1194 = vperm.xlu1 %2039, %v835_v59   ;;  %v2381_v62 = vpop.permute.xlu0 %597 }
  0x93   :  { %361 = vperm.xlu0 %2060, %v39_v60  }
  0x95   :  { %v2383_v63 = vpop.permute.xlu1 %156  ;;  %1198 = vperm.xlu1 %2039, %v836_v49   ;;  %v2385_v0 = vpop.permute.xlu0 %605 }
  0x97   :  { %882 = vperm.xlu0 %2060, %v831_v40   ;;  %v83_v40 = vld [vmem:[%s3449_s2 + $0x88] sm:$0xff] }
  0x99   :  { %v2393_v5 = vpop.permute.xlu1 %166  ;;  %2040 = vset.pattern.permute.xlu1 %v3457_v3  ;;  %v2396_v6 = vpop.permute.xlu0 %613 }
  0x9a   :  { %3497 = vst [vmem:[#allocation7_spill] sm:$0xff] %v2393_v5  ;;  %3498 = vst [vmem:[#allocation8_spill] sm:$0xff] %v2396_v6  ;;  %917 = vperm.xlu1 %2040, %v838_v1  }
  0x9b   :  { %371 = vperm.xlu0 %2060, %v41_v4   ;;  %v51_v4 = vld [vmem:[%s3451_s4 + $0x88] sm:$0xff] }
  0x9d   :  { %v2401_v8 = vpop.permute.xlu1 %336  ;;  %v2403_v9 = vpop.permute.xlu0 %617 }
  0x9e   :  { %3499 = vst [vmem:[#allocation9_spill] sm:$0xff] %v2403_v9  ;;  %396 = vperm.xlu1 %2040, %v46_v7   ;;  %v54_v7 = vld [vmem:[%s3451_s4 + $0xa0] sm:$0xff] }
  0x9f   :  { %892 = vperm.xlu0 %2060, %v833_v45   ;;  %v2476_v45 = vld [vmem:[%s3449_s2 + $0x98] sm:$0xff] }
  0xa1   :  { %v2408_v11 = vpop.permute.xlu0 %1214 }
  0xa2   :  { %3500 = vst [vmem:[#allocation10_spill] sm:$0xff] %v2408_v11  ;;  %2041 = vset.pattern.permute.xlu1 %v3459_v2  ;;  %v2411_v13 = vpop.permute.xlu1 %561 }
  0xa3   :  { %381 = vperm.xlu0 %2060, %v43_v10   ;;  %609 = vperm.xlu1 %2041, %v78_v46  }
  0xa5   :  { %v2416_v17 = vpop.permute.xlu0 %625 }
  0xa6   :  { %3501 = vst [vmem:[#allocation11_spill] sm:$0xff] %v2416_v17 }
  0xa7   :  { %902 = vperm.xlu0 %2060, %v835_v59   ;;  %1202 = vperm.xlu1 %2041, %v837_v15   ;;  %v2418_v19 = vpop.permute.xlu1 %862 }
  0xa9   :  { %v2423_v26 = vpop.permute.xlu0 %1222 }
  0xaa   :  { %3502 = vst [vmem:[#allocation12_spill] sm:$0xff] %v2423_v26 }
  0xab   :  { %391 = vperm.xlu0 %2060, %v45_v25   ;;  %1206 = vperm.xlu1 %2041, %v838_v1   ;;  %v2425_v27 = vpop.permute.xlu1 %867 }
  0xad   :  { %v2427_v28 = vpop.permute.xlu0 %633 }
  0xae   :  { %3503 = vst [vmem:[#allocation13_spill] sm:$0xff] %v2427_v28 }
  0xaf   :  { %912 = vperm.xlu0 %2060, %v837_v15   ;;  %2042 = vset.pattern.permute.xlu1 %v3457_v3  ;;  %v2433_v30 = vpop.permute.xlu1 %351 }
  0xb0   :  { %922 = vperm.xlu1 %2042, %v839_v29  }
  0xb1   :  { %v2438_v32 = vpop.permute.xlu0 %1230 }
  0xb2   :  { %3504 = vst [vmem:[#allocation14_spill] sm:$0xff] %v2438_v32 }
  0xb3   :  { %401 = vperm.xlu0 %2060, %v47_v31   ;;  %v56_v31 = vld [vmem:[%s3451_s4 + $0xb0] sm:$0xff] }
  0xb4   :  { %927 = vperm.xlu1 %2042, %v2194_v12   ;;  %v2441_v33 = vpop.permute.xlu1 %569  ;;  %v48_v12 = vld [vmem:[%s3451_s4 + $0x70] sm:$0xff] }
  0xb5   :  { %v2446_v35 = vpop.permute.xlu0 %641 }
  0xb6   :  { %3505 = vst [vmem:[#allocation15_spill] sm:$0xff] %v2446_v35 }
  0xb7   :  { %176 = vperm.xlu0 %2060, %v81_v34  }
  0xb8   :  { %411 = vperm.xlu1 %2042, %v49_v36   ;;  %v2451_v37 = vpop.permute.xlu1 %1162 }
  0xb9   :  { %v2456_v38 = vpop.permute.xlu0 %1238 }
  0xba   :  { %3506 = vst [vmem:[#allocation16_spill] sm:$0xff] %v2456_v38 }
  0xbb   :  { %406 = vperm.xlu0 %2060, %v48_v12   ;;  %v2537_v12 = vld [vmem:[%s3449_s2 + $0xc8] sm:$0xff] }
  0xbc   :  { %2043 = vset.pattern.permute.xlu1 %v3459_v2  ;;  %v2459_v39 = vpop.permute.xlu1 %1166  ;;  %3516 = vst [vmem:[#allocation26_spill] sm:$0xff] %v2537_v12 }
  0xbd   :  { %621 = vperm.xlu1 %2043, %v81_v34   ;;  %v2464_v41 = vpop.permute.xlu0 %649 }
  0xbe   :  { %3507 = vst [vmem:[#allocation17_spill] sm:$0xff] %v2464_v41 }
  0xbf   :  { %186 = vperm.xlu0 %2060, %v83_v40  }
  0xc1   :  { %1210 = vperm.xlu1 %2043, %v839_v29   ;;  %v2469_v43 = vpop.permute.xlu1 %877  ;;  %v2471_v44 = vpop.permute.xlu0 %1246 }
  0xc2   :  { %3508 = vst [vmem:[#allocation18_spill] sm:$0xff] %v2471_v44  ;;  %v97_v44 = vld [vmem:[%s3449_s2 + $0xf8] sm:$0xff] }
  0xc3   :  { %416 = vperm.xlu0 %2060, %v50_v42  }
  0xc5   :  { %2044 = vset.pattern.permute.xlu1 %v3457_v3  ;;  %v2479_v46 = vpop.permute.xlu1 %356  ;;  %v2481_v49 = vpop.permute.xlu0 %657 }
  0xc6   :  { %3509 = vst [vmem:[#allocation19_spill] sm:$0xff] %v2481_v49  ;;  %181 = vperm.xlu1 %2044, %v2207_v14   ;;  %v2498_v14 = vld [vmem:[%s3449_s2 + $0xa8] sm:$0xff] }
  0xc7   :  { %196 = vperm.xlu0 %2060, %v2476_v45  }
  0xc9   :  { %v2491_v54 = vpop.permute.xlu0 %1254 }
  0xca   :  { %3510 = vst [vmem:[#allocation20_spill] sm:$0xff] %v2491_v54  ;;  %932 = vperm.xlu1 %2044, %v841_v50   ;;  %v2493_v59 = vpop.permute.xlu1 %577 }
  0xcb   :  { %426 = vperm.xlu0 %2060, %v52_v53  }
  0xcd   :  { %v2500_v60 = vpop.permute.xlu0 %665 }
  0xce   :  { %3511 = vst [vmem:[#allocation21_spill] sm:$0xff] %v2500_v60  ;;  %937 = vperm.xlu1 %2044, %v2217_v16   ;;  %v2503_v1 = vpop.permute.xlu1 %1170  ;;  %v2519_v16 = vld [vmem:[%s3449_s2 + $0xb8] sm:$0xff] }
  0xcf   :  { %206 = vperm.xlu0 %2060, %v2498_v14   ;;  %3513 = vst [vmem:[#allocation23_spill] sm:$0xff] %v2519_v16 }
  0xd1   :  { %v2512_v10 = vpop.permute.xlu0 %1262 }
  0xd2   :  { %3512 = vst [vmem:[#allocation22_spill] sm:$0xff] %v2512_v10  ;;  %421 = vperm.xlu1 %2044, %v51_v4   ;;  %v2514_v15 = vpop.permute.xlu1 %1174  ;;  %v843_v4 = vld [vmem:[%s3450_s3 + $0x80] sm:$0xff]  ;;  %v3522_v10 = vmov 1  }
  0xd3   :  { %436 = vperm.xlu0 %2060, %v54_v7  }
  0xd5   :  { %v2521_v25 = vpop.permute.xlu0 %673 }
  0xd6   :  { %3514 = vst [vmem:[#allocation24_spill] sm:$0xff] %v2521_v25  ;;  %2045 = vset.pattern.permute.xlu1 %v3459_v2  ;;  %v60_v2 = vld [vmem:[%s3451_s4 + $0xd0] sm:$0xff]  ;;  %v2576_v25 = vld [vmem:[%s3449_s2 + $0xe8] sm:$0xff] }
  0xd7   :  { %216 = vperm.xlu0 %2060, %v2519_v16   ;;  %629 = vperm.xlu1 %2045, %v83_v40   ;;  %v2525_v29 = vpop.permute.xlu1 %887  ;;  %3520 = vst [vmem:[#allocation30_spill] sm:$0xff] %v2576_v25 }
  0xd9   :  { %v2530_v34 = vpop.permute.xlu0 %1270 }
  0xda   :  { %3515 = vst [vmem:[#allocation25_spill] sm:$0xff] %v2530_v34 }
  0xdb   :  { %446 = vperm.xlu0 %2060, %v56_v31   ;;  %1218 = vperm.xlu1 %2045, %v841_v50   ;;  %v2532_v36 = vpop.permute.xlu1 %366  ;;  %v58_v50 = vld [vmem:[%s3451_s4 + $0xc0] sm:$0xff] }
  0xdd   :  { %v2539_v42 = vpop.permute.xlu0 %681 }
  0xde   :  { %3517 = vst [vmem:[#allocation27_spill] sm:$0xff] %v2539_v42 }
  0xdf   :  { %226 = vperm.xlu0 %2060, %v2537_v12   ;;  %2046 = vset.pattern.permute.xlu1 %v3457_v3 }
  0xe0   :  { %191 = vperm.xlu1 %2046, %v2226_v18   ;;  %v2544_v40 = vpop.permute.xlu1 %585  ;;  %v2559_v18 = vld [vmem:[%s3449_s2 + $0xd8] sm:$0xff] }
  0xe1   :  { %v2549_v53 = vpop.permute.xlu0 %1278  ;;  %3519 = vst [vmem:[#allocation29_spill] sm:$0xff] %v2559_v18 }
  0xe2   :  { %3518 = vst [vmem:[#allocation28_spill] sm:$0xff] %v2549_v53  ;;  %v3470_v53 = vlaneseq }
  0xe3   :  { %456 = vperm.xlu0 %2060, %v58_v50   ;;  %v53_v50 = vld [vmem:[%s3451_s4 + $0x98] sm:$0xff] }
  0xe4   :  { %942 = vperm.xlu1 %2046, %v843_v4   ;;  %v2554_v7 = vpop.permute.xlu1 %1178  ;;  %v2583_v60 = vshrl.u32 %v3470_v53, 7  ;;  %v98_v53 = vld [vmem:[%s3447_s0] ss:$2 sm:$0x3] }
  0xe6   :  { %v102_v31 = vpop.permute.xlu0 %101  ;;  %3521 = vst [vmem:[#allocation31_spill] sm:$0xff] %v2583_v60  ;;  %v262_v54 = vsub.s32 0, %v2583_v60  ;;  %v266_v41 = vsub.s32 1, %v2583_v60  ;;  %v1925_v60 = vld [vmem:[%s3448_s1 + $0x1] ss:$2 sm:$0x3] }
  0xe7   :  { %236 = vperm.xlu0 %2060, %v2559_v18   ;;  %v3525_v18 = vmov 0  }
  0xe8   :  { %947 = vperm.xlu1 %2046, %v2235_v20   ;;  %v2563_v3 = vpop.permute.xlu1 %1182  ;;  %v2610_v28 = vrot.slane %v98_v53, %v262_v54  ;;  %v2630_v26 = vrot.slane %v1925_v60, %v266_v41 }
  0xea   :  { %v2571_v42 = vpop.permute.xlu0 %106 }
  0xeb   :  { %466 = vperm.xlu0 %2060, %v60_v2   ;;  %v62_v2 = vld [vmem:[%s3451_s4 + $0xe0] sm:$0xff] }
  0xec   :  { %431 = vperm.xlu1 %2046, %v53_v50  }
  0xed   :  { %v2578_v20 = vpop.permute.xlu1 %897 }
  0xee   :  { %v2580_v34 = vpop.permute.xlu0 %121 }
  0xef   :  { %246 = vperm.xlu0 %2060, %v2576_v25   ;;  %v64_v25 = vld [vmem:[%s3451_s4 + $0xf0] sm:$0xff] }
  0xf0   :  { %2047 = vset.pattern.permute.xlu1 %v3522_v10 }
  0xf1   :  { %637 = vperm.xlu1 %2047, %v2476_v45   ;;  %v2591_v50 = vpop.permute.xlu1 %376  ;;  %v1924_v45 = vld [vmem:[%s3447_s0 + $0x1] ss:$2 sm:$0x3] }
  0xf2   :  { %3523 = vst [vmem:[#allocation32_spill] sm:$0xff] %v2591_v50  ;;  %v2593_v49 = vpop.permute.xlu0 %131  ;;  %v2623_v32 = vrot.slane %v1924_v45, %v262_v54  ;;  %v2625_v17 = vrot.slane %v1924_v45, %v266_v41  ;;  %v2643_v45 = vmul.f32 %v2610_v28, %v2341_v47  ;;  %v2693_v50 = vmul.f32 %v2610_v28, %v2368_v57 }
  0xf3   :  { %476 = vperm.xlu0 %2060, %v62_v2   ;;  %v2612_v2 = vrot.slane %v98_v53, %v266_v41  ;;  %v2628_v53 = vrot.slane %v1925_v60, %v262_v54  ;;  %v276_v60 = vmul.f32 %v2610_v28, %v2353_v51 }
  0xf4   :  { %v706_v16 = vmul.f32 %v2625_v17, %v2355_v52  ;;  %3528 = vst [vmem:[#allocation36_spill] sm:$0xff] %v2693_v50  ;;  %v2714_v50 = vmul.f32 %v2610_v28, %v2379_v61 }
  0xf5   :  { %1226 = vperm.xlu1 %2047, %v843_v4   ;;  %v859_v4 = vld [vmem:[%s3448_s1] ss:$2 sm:$0x3]  ;;  %v2647_v6 = vmul.f32 %v2612_v2, %v2341_v47  ;;  %v277_v47 = vmul.f32 %v2612_v2, %v2353_v51  ;;  %v271_v5 = vmul.f32 %v2612_v2, %v102_v31  ;;  %v2681_v51 = vmul.f32 %v2612_v2, %v2363_v55 }
  0xf6   :  { %v2606_v35 = vpop.permute.xlu0 %141  ;;  %v2608_v38 = vpop.permute.xlu1 %593  ;;  %v2632_v9 = vrot.slane %v859_v4, %v262_v54  ;;  %v2634_v12 = vrot.slane %v859_v4, %v266_v41  ;;  %v2651_v54 = vmul.f32 %v2623_v32, %v2343_v48  ;;  %v2655_v41 = vmul.f32 %v2625_v17, %v2343_v48  ;;  %v858_v48 = vld [vmem:[%s3450_s3 + $0xf8] sm:$0xff]  ;;  %3534 = vst [vmem:[#allocation42_spill] sm:$0xff] %v2714_v50  ;;  %v1524_v50 = vld [vmem:[%s3453_s6] sm:$0xff] }
  0xf7   :  { %3524 = vst [vmem:[#allocation33_spill] sm:$0xff] %v2608_v38  ;;  %256 = vperm.xlu0 %2060, %v97_v44   ;;  %v270_v4 = vmul.f32 %v2610_v28, %v102_v31  ;;  %v2685_v31 = vmul.f32 %v2623_v32, %v2365_v56  ;;  %v2706_v38 = vmul.f32 %v2623_v32, %v2370_v58 }
  0xf9   :  { %2048 = vset.pattern.permute.xlu1 %v3525_v18  ;;  %3532 = vst [vmem:[#allocation40_spill] sm:$0xff] %v2706_v38  ;;  %v704_v38 = vmul.f32 %v2625_v17, %v2441_v33 }
  0xfa   :  { %v2636_v11 = vpop.permute.xlu0 %151  ;;  %201 = vperm.xlu1 %2048, %v2241_v21   ;;  %v2639_v44 = vpop.permute.xlu1 %1186  ;;  %v2660_v21 = vld [vmem:[%s3450_s3 + $0x90] sm:$0xff] }
  0xfb   :  { %3526 = vst [vmem:[#allocation34_spill] sm:$0xff] %v2636_v11  ;;  %3527 = vst [vmem:[#allocation35_spill] sm:$0xff] %v2639_v44  ;;  %486 = vperm.xlu0 %2060, %v64_v25   ;;  %v705_v25 = vmul.f32 %v2623_v32, %v2355_v52  ;;  %v2677_v11 = vmul.f32 %v2610_v28, %v2363_v55  ;;  %v2689_v44 = vmul.f32 %v2625_v17, %v2365_v56 }
  0xfc   :  { %v2697_v52 = vmul.f32 %v2612_v2, %v2368_v57  ;;  %v2710_v56 = vmul.f32 %v2625_v17, %v2370_v58  ;;  %v2718_v57 = vmul.f32 %v2612_v2, %v2379_v61  ;;  %v494_v58 = vadd.f32 %v2401_v8, %v270_v4 }
  0xfd   :  { %v2735_v61 = vmul.f32 %v2610_v28, %v2383_v63  ;;  %v2745_v4 = vmul.f32 %v2623_v32, %v2385_v0 }
  0xfe   :  { %3529 = vst [vmem:[#allocation37_spill] sm:$0xff] %v2697_v52  ;;  %v2699_v24 = vpop.permute.xlu0 %161  ;;  %952 = vperm.xlu1 %2048, %v2660_v21   ;;  %v2702_v55 = vpop.permute.xlu1 %1190  ;;  %3533 = vst [vmem:[#allocation41_spill] sm:$0xff] %v2710_v56  ;;  %v495_v56 = vadd.f32 %v2401_v8, %v271_v5  ;;  %v2749_v5 = vmul.f32 %v2625_v17, %v2385_v0  ;;  %v699_v8 = vmul.f32 %v2623_v32, %v2411_v13 }
  0xff   :  { %3530 = vst [vmem:[#allocation38_spill] sm:$0xff] %v2699_v24  ;;  %3531 = vst [vmem:[#allocation39_spill] sm:$0xff] %v2702_v55  ;;  %1017 = vperm.xlu0 %2060, %v858_v48   ;;  %v2722_v24 = vmul.f32 %v2623_v32, %v2381_v62  ;;  %v2726_v55 = vmul.f32 %v2625_v17, %v2381_v62  ;;  %v2739_v48 = vmul.f32 %v2612_v2, %v2383_v63 }
 0x100   :  { %3535 = vst [vmem:[#allocation43_spill] sm:$0xff] %v2718_v57  ;;  %3538 = vst [vmem:[#allocation46_spill] sm:$0xff] %v2735_v61  ;;  %v501_v62 = vadd.f32 %v2433_v30, %v277_v47  ;;  %v700_v61 = vmul.f32 %v2625_v17, %v2411_v13  ;;  %v272_v0 = vmul.f32 %v2610_v28, %v2571_v42  ;;  %v55_v13 = vld [vmem:[%s3451_s4 + $0xa8] sm:$0xff] }
 0x101   :  { %3536 = vst [vmem:[#allocation44_spill] sm:$0xff] %v2722_v24  ;;  %3537 = vst [vmem:[#allocation45_spill] sm:$0xff] %v2726_v55  ;;  %v500_v24 = vadd.f32 %v2433_v30, %v276_v60  ;;  %v1031_v30 = vmul.f32 %v2632_v9, %v2418_v19  ;;  %v1038_v60 = vmul.f32 %v2634_v12, %v2469_v43  ;;  %v1526_v55 = vld [vmem:[%s3453_s6 + $0x10] sm:$0xff] }
 0x102   :  { %3539 = vst [vmem:[#allocation47_spill] sm:$0xff] %v2739_v48  ;;  %3540 = vst [vmem:[#allocation48_spill] sm:$0xff] %v2745_v4  ;;  %v2755_v63 = vpop.permute.xlu0 %171  ;;  %957 = vperm.xlu1 %2048, %v2248_v22   ;;  %v273_v47 = vmul.f32 %v2612_v2, %v2571_v42  ;;  %v1032_v22 = vmul.f32 %v2634_v12, %v2418_v19  ;;  %v763_v4 = vadd.f32 %v699_v8, %v494_v58 }
 0x103   :  { %3541 = vst [vmem:[#allocation49_spill] sm:$0xff] %v2749_v5  ;;  %3542 = vst [vmem:[#allocation50_spill] sm:$0xff] %v2755_v63  ;;  %1542 = vperm.xlu0 %2060, %v1524_v50   ;;  %v2766_v5 = vpop.permute.xlu1 %907  ;;  %v1033_v63 = vmul.f32 %v2632_v9, %v2425_v27  ;;  %v764_v48 = vadd.f32 %v700_v61, %v495_v56  ;;  %v1034_v42 = vmul.f32 %v2634_v12, %v2425_v27 }
 0x104   :  { %3543 = vst [vmem:[#allocation51_spill] sm:$0xff] %v2766_v5  ;;  %v769_v50 = vadd.f32 %v705_v25, %v500_v24  ;;  %v770_v5 = vadd.f32 %v706_v16, %v501_v62  ;;  %v1307_v57 = vmul.f32 %v2630_v26, %v2514_v15  ;;  %v703_v19 = vmul.f32 %v2623_v32, %v2441_v33 }
 0x105   :  { %v1300_v56 = vmul.f32 %v2628_v53, %v2451_v37  ;;  %v1037_v58 = vmul.f32 %v2632_v9, %v2469_v43  ;;  %v1301_v24 = vmul.f32 %v2630_v26, %v2451_v37  ;;  %v1302_v33 = vmul.f32 %v2628_v53, %v2459_v39  ;;  %v1528_v43 = vld [vmem:[%s3453_s6 + $0x20] sm:$0xff] }
 0x106   :  { %v342_v61 = vpop.permute.xlu0 %341  ;;  %441 = vperm.xlu1 %2048, %v55_v13   ;;  %v1102_v27 = vadd.f32 %v1038_v60, %v770_v5  ;;  %v1303_v8 = vmul.f32 %v2630_v26, %v2459_v39  ;;  %v1096_v13 = vadd.f32 %v1032_v22, %v764_v48  ;;  %v1095_v52 = vadd.f32 %v1031_v30, %v763_v4 }
 0x107   :  { %v496_v16 = vadd.f32 %v342_v61, %v272_v0  ;;  %v497_v25 = vadd.f32 %v342_v61, %v273_v47  ;;  %1552 = vperm.xlu0 %2060, %v1526_v55   ;;  %v2792_v62 = vpop.permute.xlu1 %386  ;;  %v1306_v37 = vmul.f32 %v2628_v53, %v2514_v15  ;;  %v1101_v0 = vadd.f32 %v1037_v58, %v769_v50 }
 0x108   :  { %v2803_v5 = vadd.f32 %v1307_v57, %v1102_v27  ;;  %v2809_v47 = vmul.f32 %v2623_v32, %v2493_v59  ;;  %v2813_v39 = vmul.f32 %v2625_v17, %v2493_v59  ;;  %v1304_v48 = vmul.f32 %v2628_v53, %v2503_v1  ;;  %v1530_v59 = vld [vmem:[%s3453_s6 + $0x30] sm:$0xff] }
 0x109   :  { %v765_v55 = vadd.f32 %v2651_v54, %v496_v16  ;;  %v766_v60 = vadd.f32 %v2655_v41, %v497_v25  ;;  %v1305_v57 = vmul.f32 %v2630_v26, %v2503_v1  ;;  %v1365_v50 = vadd.f32 %v1301_v24, %v1096_v13 }
 0x10a   :  { %v347_v4 = vpop.permute.xlu0 %346  ;;  %2049 = vset.pattern.permute.xlu1 %v3522_v10  ;;  %v1364_v58 = vadd.f32 %v1300_v56, %v1095_v52  ;;  %v278_v1 = vmul.f32 %v2610_v28, %v2580_v34  ;;  %v279_v61 = vmul.f32 %v2612_v2, %v2580_v34 }
 0x10b   :  { %v1097_v15 = vadd.f32 %v1033_v63, %v765_v55  ;;  %v498_v54 = vadd.f32 %v347_v4, %v2643_v45  ;;  %v499_v41 = vadd.f32 %v347_v4, %v2647_v6  ;;  %1562 = vperm.xlu0 %2060, %v1528_v43   ;;  %645 = vperm.xlu1 %2049, %v2498_v14   ;;  %v1435_v45 = vmax.f32 %v2803_v5, 0.0  ;;  %v1532_v43 = vld [vmem:[%s3453_s6 + $0x40] sm:$0xff] }
 0x10c   :  { %v2823_v30 = vpop.permute.xlu1 %601  ;;  %v1098_v22 = vadd.f32 %v1034_v42, %v766_v60  ;;  %v2828_v63 = vadd.f32 %v1306_v37, %v1101_v0  ;;  %v1041_v6 = vmul.f32 %v2632_v9, %v2525_v29  ;;  %v1042_v14 = vmul.f32 %v2634_v12, %v2525_v29 }
 0x10d   :  { %v1366_v24 = vadd.f32 %v1302_v33, %v1097_v15  ;;  %v767_v52 = vadd.f32 %v703_v19, %v498_v54  ;;  %v768_v56 = vadd.f32 %v704_v38, %v499_v41  ;;  %v1429_v13 = vmax.f32 %v1365_v50, 0.0 }
 0x10e   :  { %v873_v27 = vpop.permute.xlu0 %872  ;;  %v1367_v42 = vadd.f32 %v1303_v8, %v1098_v22  ;;  %v1428_v37 = vmax.f32 %v1364_v58, 0.0  ;;  %v2849_v38 = vmul.f32 %v2623_v32, %v2544_v40  ;;  %v2853_v19 = vmul.f32 %v2625_v17, %v2544_v40 }
 0x10f   :  { %v1035_v16 = vmul.f32 %v2632_v9, %v873_v27  ;;  %v1036_v25 = vmul.f32 %v2634_v12, %v873_v27  ;;  %1572 = vperm.xlu0 %2060, %v1530_v59   ;;  %1234 = vperm.xlu1 %2049, %v2660_v21   ;;  %v1430_v8 = vmax.f32 %v1366_v24, 0.0  ;;  %v502_v5 = vadd.f32 %v2479_v46, %v278_v1 }
 0x110   :  { %v2842_v29 = vpop.permute.xlu1 %1194  ;;  %v1431_v34 = vmax.f32 %v1367_v42, 0.0  ;;  %v503_v55 = vadd.f32 %v2479_v46, %v279_v61  ;;  %v1308_v40 = vmul.f32 %v2628_v53, %v2554_v7  ;;  %v282_v22 = vmul.f32 %v2610_v28, %v2593_v49 }
 0x111   :  { %v1099_v33 = vadd.f32 %v1035_v16, %v767_v52  ;;  %v1100_v21 = vadd.f32 %v1036_v25, %v768_v56  ;;  %v1928_v4 = vpack.c.bf16 %v1430_v8, %v1428_v37  ;;  %v283_v50 = vmul.f32 %v2612_v2, %v2593_v49 }
 0x112   :  { %v362_v60 = vpop.permute.xlu0 %361  ;;  %v1926_v0 = vpack.c.bf16 %v1431_v34, %v1429_v13  ;;  %v1311_v1 = vmul.f32 %v2630_v26, %v2563_v3  ;;  %v771_v27 = vadd.f32 %v2809_v47, %v502_v5  ;;  %v772_v42 = vadd.f32 %v2813_v39, %v503_v55  ;;  %v1536_v13 = vld [vmem:[%s3453_s6 + $0x60] sm:$0xff] }
 0x113   :  { %v1368_v15 = vadd.f32 %v1304_v48, %v1099_v33  ;;  %v1369_v54 = vadd.f32 %v1305_v57, %v1100_v21  ;;  %v504_v41 = vadd.f32 %v362_v60, %v2677_v11  ;;  %v505_v59 = vadd.f32 %v362_v60, %v2681_v51  ;;  %1582 = vperm.xlu0 %2060, %v1532_v43   ;;  %v1534_v11 = vld [vmem:[%s3453_s6 + $0x50] sm:$0xff]  ;;  %v3545_v55 = vld [vmem:[#allocation37_spill] sm:$0xff] }
 0x114   :  { %2050 = vset.pattern.permute.xlu1 %v3525_v18  ;;  %1927 = vmatprep.subr.bf16.mxu0 %v1926_v0  ;;  %v2866_v46 = vpop.permute.xlu1 %1198  ;;  %v1434_v51 = vmax.f32 %v2828_v63, 0.0  ;;  %v1310_v48 = vmul.f32 %v2628_v53, %v2563_v3  ;;  %v2884_v63 = vld [vmem:[%s3450_s3 + $0xa0] sm:$0xff]  ;;  %v506_v3 = vadd.f32 %v2532_v36, %v282_v22  ;;  %v507_v56 = vadd.f32 %v2532_v36, %v283_v50  ;;  %v3544_v21 = vld [vmem:[#allocation36_spill] sm:$0xff] }
 0x115   :  { %v773_v57 = vadd.f32 %v2685_v31, %v504_v41  ;;  %v774_v58 = vadd.f32 %v2689_v44, %v505_v59  ;;  %1929 = vmatpush1.bf16.msra.mxu0 %v1928_v4  ;;  %211 = vperm.xlu1 %2050, %v2254_v23   ;;  %v1433_v49 = vmax.f32 %v1369_v54, 0.0  ;;  %v1432_v31 = vmax.f32 %v1368_v15, 0.0  ;;  %v3546_v4 = vld [vmem:[#allocation33_spill] sm:$0xff]  ;;  %v3547_v41 = vld [vmem:[#allocation40_spill] sm:$0xff]  ;;  %v3549_v50 = vld [vmem:[#allocation6_spill] sm:$0xff] }
 0x116   :  { %v883_v61 = vpop.permute.xlu0 %882  ;;  %v1309_v39 = vmul.f32 %v2630_v26, %v2554_v7  ;;  %v1045_v25 = vmul.f32 %v2632_v9, %v2578_v20  ;;  %v286_v36 = vmul.f32 %v2610_v28, %v2606_v35  ;;  %v1046_v0 = vmul.f32 %v2634_v12, %v2578_v20  ;;  %v1538_v20 = vld [vmem:[%s3453_s6 + $0x70] sm:$0xff] }
 0x117   :  { %v1105_v24 = vadd.f32 %v1041_v6, %v773_v57  ;;  %v1106_v44 = vadd.f32 %v1042_v14, %v774_v58  ;;  %v1039_v52 = vmul.f32 %v2632_v9, %v883_v61  ;;  %v1040_v23 = vmul.f32 %v2634_v12, %v883_v61  ;;  %1592 = vperm.xlu0 %2060, %v1534_v11   ;;  %v3550_v57 = vld [vmem:[#allocation32_spill] sm:$0xff] }
 0x118   :  { %v1930_v47 = vpack.c.bf16 %v1435_v45, %v1433_v49  ;;  %v1932_v16 = vpack.c.bf16 %v1434_v51, %v1432_v31  ;;  %v287_v45 = vmul.f32 %v2612_v2, %v2606_v35  ;;  %v715_v15 = vmul.f32 %v2623_v32, %v3546_v4 }
 0x119   :  { %v1103_v43 = vadd.f32 %v1039_v52, %v771_v27  ;;  %v1104_v6 = vadd.f32 %v1040_v23, %v772_v42  ;;  %962 = vperm.xlu1 %2050, %v2884_v63   ;;  %v2895_v14 = vpop.permute.xlu1 %917  ;;  %v1375_v34 = vadd.f32 %v1311_v1, %v1106_v44  ;;  %v1374_v37 = vadd.f32 %v1310_v48, %v1105_v24  ;;  %v3551_v44 = vld [vmem:[#allocation39_spill] sm:$0xff] }
 0x11a   :  { %1931 = vmatprep.subr.bf16.mxu0 %v1930_v47  ;;  %v372_v7 = vpop.permute.xlu0 %371  ;;  %v775_v35 = vadd.f32 %v2849_v38, %v506_v3  ;;  %v776_v54 = vadd.f32 %v2853_v19, %v507_v56  ;;  %v510_v58 = vadd.f32 %v3550_v57, %v286_v36  ;;  %v511_v38 = vadd.f32 %v3550_v57, %v287_v45  ;;  %v57_v19 = vld [vmem:[%s3451_s4 + $0xb8] sm:$0xff]  ;;  %v3552_v47 = vld [vmem:[#allocation35_spill] sm:$0xff] }
 0x11b   :  { %v1372_v8 = vadd.f32 %v1308_v40, %v1103_v43  ;;  %v1373_v33 = vadd.f32 %v1309_v39, %v1104_v6  ;;  %v508_v5 = vadd.f32 %v372_v7, %v3544_v21  ;;  %v509_v60 = vadd.f32 %v372_v7, %v3545_v55  ;;  %1933 = vmatpush1.bf16.msra.mxu0 %v1932_v16  ;;  %v3548_v40 = vld [vmem:[#allocation41_spill] sm:$0xff]  ;;  %v3559_v57 = vld [vmem:[#allocation23_spill] sm:$0xff] }
 0x11c   :  { %1602 = vperm.xlu0 %2060, %v1536_v13   ;;  %v1439_v1 = vmax.f32 %v1375_v34, 0.0  ;;  %v1438_v61 = vmax.f32 %v1374_v37, 0.0  ;;  %v1314_v52 = vmul.f32 %v2628_v53, %v3551_v44  ;;  %v1315_v23 = vmul.f32 %v2630_v26, %v3551_v44 }
 0x11d   :  { %v777_v59 = vadd.f32 %v3547_v41, %v508_v5  ;;  %v778_v22 = vadd.f32 %v3548_v40, %v509_v60  ;;  %967 = vperm.xlu1 %2050, %v3549_v50   ;;  %v2915_v11 = vpop.permute.xlu1 %396  ;;  %v1437_v51 = vmax.f32 %v1373_v33, 0.0  ;;  %v1436_v48 = vmax.f32 %v1372_v8, 0.0  ;;  %v3553_v33 = vld [vmem:[#allocation42_spill] sm:$0xff]  ;;  %v3554_v5 = vld [vmem:[#allocation43_spill] sm:$0xff]  ;;  %v3557_v41 = vld [vmem:[#allocation44_spill] sm:$0xff] }
 0x11e   :  { %v893_v49 = vpop.permute.xlu0 %892  ;;  %v1312_v16 = vmul.f32 %v2628_v53, %v3552_v47  ;;  %v1313_v39 = vmul.f32 %v2630_v26, %v3552_v47  ;;  %v716_v6 = vmul.f32 %v2625_v17, %v3546_v4  ;;  %v779_v13 = vadd.f32 %v715_v15, %v510_v58  ;;  %v3558_v40 = vld [vmem:[#allocation45_spill] sm:$0xff] }
 0x11f   :  { %v1109_v27 = vadd.f32 %v1045_v25, %v777_v59  ;;  %v1110_v42 = vadd.f32 %v1046_v0, %v778_v22  ;;  %v1043_v31 = vmul.f32 %v2632_v9, %v893_v49  ;;  %v1044_v24 = vmul.f32 %v2634_v12, %v893_v49  ;;  %v3555_v0 = vld [vmem:[#allocation34_spill] sm:$0xff] }
 0x120   :  { %1612 = vperm.xlu0 %2060, %v1538_v20   ;;  %v1934_v3 = vpack.c.bf16 %v1439_v1, %v1437_v51  ;;  %v1936_v56 = vpack.c.bf16 %v1438_v61, %v1436_v48  ;;  %v780_v60 = vadd.f32 %v716_v6, %v511_v38  ;;  %v291_v51 = vmul.f32 %v2612_v2, %v3555_v0 }
 0x121   :  { %v1107_v25 = vadd.f32 %v1043_v31, %v775_v35  ;;  %v1108_v43 = vadd.f32 %v1044_v24, %v776_v54  ;;  %451 = vperm.xlu1 %2050, %v57_v19   ;;  %v1379_v7 = vadd.f32 %v1315_v23, %v1110_v42  ;;  %v1378_v34 = vadd.f32 %v1314_v52, %v1109_v27  ;;  %v3556_v54 = vld [vmem:[#allocation51_spill] sm:$0xff] }
 0x122   :  { %1935 = vmatprep.subr.bf16.mxu0 %v1934_v3  ;;  %v382_v36 = vpop.permute.xlu0 %381  ;;  %v2937_v45 = vpop.permute.xlu1 %609  ;;  %v290_v35 = vmul.f32 %v2610_v28, %v3555_v0  ;;  %v1049_v4 = vmul.f32 %v2632_v9, %v3556_v54  ;;  %v1050_v15 = vmul.f32 %v2634_v12, %v3556_v54  ;;  %v719_v48 = vmul.f32 %v2623_v32, %v2823_v30 }
 0x123   :  { %v1376_v37 = vadd.f32 %v1312_v16, %v1107_v25  ;;  %v1377_v8 = vadd.f32 %v1313_v39, %v1108_v43  ;;  %v512_v21 = vadd.f32 %v382_v36, %v3553_v33  ;;  %v513_v55 = vadd.f32 %v382_v36, %v3554_v5  ;;  %1937 = vmatpush1.bf16.msra.mxu0 %v1936_v56  ;;  %v3562_v33 = vld [vmem:[#allocation48_spill] sm:$0xff]  ;;  %v3563_v5 = vld [vmem:[#allocation49_spill] sm:$0xff] }
 0x124   :  { %v1443_v49 = vmax.f32 %v1379_v7, 0.0  ;;  %v1442_v19 = vmax.f32 %v1378_v34, 0.0  ;;  %v1318_v31 = vmul.f32 %v2628_v53, %v2866_v46  ;;  %v1319_v24 = vmul.f32 %v2630_v26, %v2866_v46  ;;  %v3560_v7 = vld [vmem:[#allocation46_spill] sm:$0xff] }
 0x125   :  { %v781_v59 = vadd.f32 %v3557_v41, %v512_v21  ;;  %v782_v22 = vadd.f32 %v3558_v40, %v513_v55  ;;  %2051 = vset.pattern.permute.xlu1 %v3522_v10  ;;  %v1441_v50 = vmax.f32 %v1377_v8, 0.0  ;;  %v1440_v20 = vmax.f32 %v1376_v37, 0.0  ;;  %v3561_v37 = vld [vmem:[#allocation47_spill] sm:$0xff] }
 0x126   :  { %653 = vperm.xlu1 %2051, %v3559_v57   ;;  %v903_v58 = vpop.permute.xlu0 %902  ;;  %v1203_v38 = vpop.permute.xlu1 %1202  ;;  %v1316_v23 = vmul.f32 %v2628_v53, %v2842_v29  ;;  %v1317_v3 = vmul.f32 %v2630_v26, %v2842_v29  ;;  %v720_v16 = vmul.f32 %v2625_v17, %v2823_v30  ;;  %v514_v29 = vadd.f32 %v2792_v62, %v290_v35  ;;  %v2989_v57 = vld [vmem:[%s3450_s3 + $0xb0] sm:$0xff] }
 0x127   :  { %v1113_v1 = vadd.f32 %v1049_v4, %v781_v59  ;;  %v1114_v61 = vadd.f32 %v1050_v15, %v782_v22  ;;  %v1047_v27 = vmul.f32 %v2632_v9, %v903_v58  ;;  %v1048_v42 = vmul.f32 %v2634_v12, %v903_v58 }
 0x128   :  { %v1938_v44 = vpack.c.bf16 %v1443_v49, %v1441_v50  ;;  %v1940_v52 = vpack.c.bf16 %v1442_v19, %v1440_v20  ;;  %v1053_v30 = vmul.f32 %v2632_v9, %v2895_v14  ;;  %v783_v54 = vadd.f32 %v719_v48, %v514_v29 }
 0x129   :  { %v1111_v56 = vadd.f32 %v1047_v27, %v779_v13  ;;  %v1112_v47 = vadd.f32 %v1048_v42, %v780_v60  ;;  %v1383_v43 = vadd.f32 %v1319_v24, %v1114_v61  ;;  %v1382_v46 = vadd.f32 %v1318_v31, %v1113_v1  ;;  %v3564_v24 = vld [vmem:[#allocation7_spill] sm:$0xff] }
 0x12a   :  { %1242 = vperm.xlu1 %2051, %v2884_v63   ;;  %1939 = vmatprep.subr.bf16.mxu0 %v1938_v44  ;;  %v392_v39 = vpop.permute.xlu0 %391  ;;  %v1207_v25 = vpop.permute.xlu1 %1206  ;;  %v515_v13 = vadd.f32 %v2792_v62, %v291_v51  ;;  %v1054_v63 = vmul.f32 %v2634_v12, %v2895_v14  ;;  %v2064_v14 = vld [vmem:[%s3449_s2 + $0xc0] sm:$0xff]  ;;  %v1320_v49 = vmul.f32 %v2628_v53, %v1203_v38 }
 0x12b   :  { %v1380_v6 = vadd.f32 %v1316_v23, %v1111_v56  ;;  %v1381_v36 = vadd.f32 %v1317_v3, %v1112_v47  ;;  %v516_v34 = vadd.f32 %v392_v39, %v3560_v7  ;;  %v517_v8 = vadd.f32 %v392_v39, %v3561_v37  ;;  %1941 = vmatpush1.bf16.msra.mxu0 %v1940_v52  ;;  %v2065_v7 = vld [vmem:[%s3450_s3 + $0xb8] sm:$0xff]  ;;  %v3566_v37 = vld [vmem:[#allocation38_spill] sm:$0xff] }
 0x12c   :  { %v784_v4 = vadd.f32 %v720_v16, %v515_v13  ;;  %v1447_v35 = vmax.f32 %v1383_v43, 0.0  ;;  %v1446_v41 = vmax.f32 %v1382_v46, 0.0  ;;  %v1322_v20 = vmul.f32 %v2628_v53, %v1207_v25  ;;  %v3565_v46 = vld [vmem:[#allocation8_spill] sm:$0xff] }
 0x12d   :  { %v785_v21 = vadd.f32 %v3562_v33, %v516_v34  ;;  %v786_v55 = vadd.f32 %v3563_v5, %v517_v8  ;;  %v1445_v60 = vmax.f32 %v1381_v36, 0.0  ;;  %v1444_v0 = vmax.f32 %v1380_v6, 0.0 }
 0x12e   :  { %2052 = vset.pattern.permute.xlu1 %v3525_v18  ;;  %v913_v15 = vpop.permute.xlu0 %912  ;;  %v1323_v51 = vmul.f32 %v2630_v26, %v1207_v25  ;;  %v1321_v19 = vmul.f32 %v2630_v26, %v1203_v38  ;;  %v296_v44 = vmul.f32 %v2610_v28, %v3564_v24  ;;  %v297_v52 = vmul.f32 %v2612_v2, %v3564_v24 }
 0x12f   :  { %v1117_v62 = vadd.f32 %v1053_v30, %v785_v21  ;;  %v1118_v59 = vadd.f32 %v1054_v63, %v786_v55  ;;  %v1051_v40 = vmul.f32 %v2632_v9, %v913_v15  ;;  %v1052_v22 = vmul.f32 %v2634_v12, %v913_v15  ;;  %221 = vperm.xlu1 %2052, %v2064_v14   ;;  %v923_v50 = vpop.permute.xlu1 %922  ;;  %v59_v30 = vld [vmem:[%s3451_s4 + $0xc8] sm:$0xff] }
 0x130   :  { %v1942_v48 = vpack.c.bf16 %v1447_v35, %v1445_v60  ;;  %v1944_v58 = vpack.c.bf16 %v1446_v41, %v1444_v0  ;;  %v725_v6 = vmul.f32 %v2623_v32, %v3565_v46  ;;  %v726_v36 = vmul.f32 %v2625_v17, %v3565_v46  ;;  %v3567_v14 = vld [vmem:[#allocation10_spill] sm:$0xff] }
 0x131   :  { %v1115_v1 = vadd.f32 %v1051_v40, %v783_v54  ;;  %v1116_v61 = vadd.f32 %v1052_v22, %v784_v4  ;;  %v1386_v27 = vadd.f32 %v1322_v20, %v1117_v62  ;;  %v1387_v42 = vadd.f32 %v1323_v51, %v1118_v59 }
 0x132   :  { %1943 = vmatprep.subr.bf16.mxu0 %v1942_v48  ;;  %v402_v31 = vpop.permute.xlu0 %401  ;;  %v294_v8 = vmul.f32 %v2610_v28, %v3566_v37  ;;  %v295_v29 = vmul.f32 %v2612_v2, %v3566_v37  ;;  %v723_v60 = vmul.f32 %v2623_v32, %v2937_v45  ;;  %v724_v0 = vmul.f32 %v2625_v17, %v2937_v45 }
 0x133   :  { %v1384_v23 = vadd.f32 %v1320_v49, %v1115_v1  ;;  %v1385_v3 = vadd.f32 %v1321_v19, %v1116_v61  ;;  %972 = vperm.xlu1 %2052, %v2989_v57   ;;  %v928_v56 = vpop.permute.xlu1 %927  ;;  %1945 = vmatpush1.bf16.msra.mxu0 %v1944_v58  ;;  %v520_v47 = vadd.f32 %v402_v31, %v296_v44  ;;  %v1451_v25 = vmax.f32 %v1387_v42, 0.0 }
 0x134   :  { %v521_v38 = vadd.f32 %v402_v31, %v297_v52  ;;  %v1450_v43 = vmax.f32 %v1386_v27, 0.0  ;;  %v1057_v5 = vmul.f32 %v2632_v9, %v928_v56  ;;  %v1058_v55 = vmul.f32 %v2634_v12, %v928_v56  ;;  %v2066_v56 = vld [vmem:[%s3449_s2 + $0xd0] sm:$0xff] }
 0x135   :  { %v1449_v16 = vmax.f32 %v1385_v3, 0.0  ;;  %v1448_v39 = vmax.f32 %v1384_v23, 0.0  ;;  %v789_v33 = vadd.f32 %v725_v6, %v520_v47  ;;  %v518_v54 = vadd.f32 %v2915_v11, %v294_v8  ;;  %v2067_v8 = vld [vmem:[%s3450_s3 + $0xc8] sm:$0xff] }
 0x136   :  { %v790_v21 = vadd.f32 %v726_v36, %v521_v38  ;;  %v519_v4 = vadd.f32 %v2915_v11, %v295_v29  ;;  %v1055_v15 = vmul.f32 %v2632_v9, %v923_v50  ;;  %v1056_v35 = vmul.f32 %v2634_v12, %v923_v50  ;;  %v3568_v11 = vld [vmem:[#allocation26_spill] sm:$0xff]  ;;  %v177_v38 = vpop.permute.xlu0 %176 }
 0x137   :  { %977 = vperm.xlu1 %2052, %v2065_v7   ;;  %v3005_v34 = vpop.permute.xlu1 %411  ;;  %v1946_v13 = vpack.c.bf16 %v1451_v25, %v1449_v16  ;;  %v1948_v63 = vpack.c.bf16 %v1450_v43, %v1448_v39  ;;  %v1121_v62 = vadd.f32 %v1057_v5, %v789_v33  ;;  %v787_v40 = vadd.f32 %v723_v60, %v518_v54  ;;  %v3569_v43 = vld [vmem:[#allocation50_spill] sm:$0xff]  ;;  %v3570_v54 = vld [vmem:[#allocation9_spill] sm:$0xff] }
 0x138   :  { %v1122_v59 = vadd.f32 %v1058_v55, %v790_v21  ;;  %v788_v22 = vadd.f32 %v724_v0, %v519_v4  ;;  %v1326_v20 = vmul.f32 %v2628_v53, %v3567_v14  ;;  %v1327_v45 = vmul.f32 %v2630_v26, %v3567_v14  ;;  %v3571_v14 = vld [vmem:[#allocation12_spill] sm:$0xff] }
 0x139   :  { %1947 = vmatprep.subr.bf16.mxu0 %v1946_v13  ;;  %v1119_v51 = vadd.f32 %v1055_v15, %v787_v40  ;;  %v300_v39 = vmul.f32 %v2610_v28, %v177_v38  ;;  %v301_v25 = vmul.f32 %v2612_v2, %v177_v38  ;;  %v298_v46 = vmul.f32 %v2610_v28, %v3569_v43  ;;  %v61_v13 = vld [vmem:[%s3451_s4 + $0xd8] sm:$0xff] }
 0x13a   :  { %1949 = vmatpush1.bf16.msra.mxu0 %v1948_v63  ;;  %v1120_v48 = vadd.f32 %v1056_v35, %v788_v22  ;;  %v1391_v19 = vadd.f32 %v1327_v45, %v1122_v59  ;;  %v1390_v1 = vadd.f32 %v1326_v20, %v1121_v62  ;;  %v299_v6 = vmul.f32 %v2612_v2, %v3569_v43  ;;  %v407_v36 = vpop.permute.xlu0 %406 }
 0x13b   :  { %461 = vperm.xlu1 %2052, %v59_v30   ;;  %v524_v30 = vadd.f32 %v3005_v34, %v300_v39  ;;  %v525_v63 = vadd.f32 %v3005_v34, %v301_v25  ;;  %v522_v5 = vadd.f32 %v407_v36, %v298_v46  ;;  %v727_v4 = vmul.f32 %v2623_v32, %v3570_v54 }
 0x13c   :  { %v622_v41 = vpop.permute.xlu1 %621  ;;  %v1455_v24 = vmax.f32 %v1391_v19, 0.0  ;;  %v1454_v52 = vmax.f32 %v1390_v1, 0.0  ;;  %v523_v55 = vadd.f32 %v407_v36, %v299_v6  ;;  %v728_v15 = vmul.f32 %v2625_v17, %v3570_v54  ;;  %v3573_v54 = vld [vmem:[#allocation11_spill] sm:$0xff] }
 0x13d   :  { %v729_v7 = vmul.f32 %v2623_v32, %v622_v41  ;;  %v730_v37 = vmul.f32 %v2625_v17, %v622_v41  ;;  %v791_v40 = vadd.f32 %v727_v4, %v522_v5  ;;  %v1330_v20 = vmul.f32 %v2628_v53, %v3571_v14 }
 0x13e   :  { %v792_v22 = vadd.f32 %v728_v15, %v523_v55  ;;  %v1331_v45 = vmul.f32 %v2630_v26, %v3571_v14  ;;  %v731_v4 = vmul.f32 %v2623_v32, %v3573_v54  ;;  %v732_v15 = vmul.f32 %v2625_v17, %v3573_v54 }
 0x13f   :  { %2053 = vset.pattern.permute.xlu1 %v3522_v10  ;;  %v793_v60 = vadd.f32 %v729_v7, %v524_v30  ;;  %v794_v0 = vadd.f32 %v730_v37, %v525_v63  ;;  %v2069_v37 = vld [vmem:[%s3450_s3 + $0xd8] sm:$0xff] }
 0x140   :  { %661 = vperm.xlu1 %2053, %v3568_v11   ;;  %v1211_v58 = vpop.permute.xlu1 %1210  ;;  %v3572_v11 = vld [vmem:[#allocation29_spill] sm:$0xff] }
 0x141   :  { %v1324_v50 = vmul.f32 %v2628_v53, %v1211_v58  ;;  %v1325_v49 = vmul.f32 %v2630_v26, %v1211_v58 }
 0x143   :  { %v1388_v61 = vadd.f32 %v1324_v50, %v1119_v51  ;;  %v1389_v27 = vadd.f32 %v1325_v49, %v1120_v48 }
 0x144   :  { %1250 = vperm.xlu1 %2053, %v2989_v57   ;;  %v851_v57 = vld [vmem:[%s3450_s3 + $0xc0] sm:$0xff] }
 0x145   :  { %v3033_v42 = vpop.permute.xlu1 %181  ;;  %v1453_v31 = vmax.f32 %v1389_v27, 0.0  ;;  %v1452_v44 = vmax.f32 %v1388_v61, 0.0 }
 0x146   :  { %v302_v46 = vmul.f32 %v2610_v28, %v3033_v42  ;;  %v303_v6 = vmul.f32 %v2612_v2, %v3033_v42 }
 0x147   :  { %v1950_v23 = vpack.c.bf16 %v1455_v24, %v1453_v31  ;;  %v1952_v3 = vpack.c.bf16 %v1454_v52, %v1452_v44 }
 0x148   :  { %2054 = vset.pattern.permute.xlu1 %v3525_v18 }
 0x149   :  { %231 = vperm.xlu1 %2054, %v2066_v56   ;;  %1951 = vmatprep.subr.bf16.mxu0 %v1950_v23  ;;  %v933_v47 = vpop.permute.xlu1 %932 }
 0x14a   :  { %1953 = vmatpush1.bf16.msra.mxu0 %v1952_v3  ;;  %v1059_v35 = vmul.f32 %v2632_v9, %v933_v47  ;;  %v1060_v41 = vmul.f32 %v2634_v12, %v933_v47  ;;  %v2068_v47 = vld [vmem:[%s3449_s2 + $0xe0] sm:$0xff] }
 0x14c   :  { %v1123_v51 = vadd.f32 %v1059_v35, %v791_v40  ;;  %v1124_v48 = vadd.f32 %v1060_v41, %v792_v22  ;;  %v3574_v22 = vld [vmem:[#allocation14_spill] sm:$0xff] }
 0x14d   :  { %982 = vperm.xlu1 %2054, %v851_v57   ;;  %v938_v16 = vpop.permute.xlu1 %937  ;;  %v1334_v14 = vmul.f32 %v2628_v53, %v3574_v22 }
 0x14e   :  { %v1061_v33 = vmul.f32 %v2632_v9, %v938_v16  ;;  %v1062_v21 = vmul.f32 %v2634_v12, %v938_v16  ;;  %v187_v16 = vpop.permute.xlu0 %186 }
 0x14f   :  { %v304_v25 = vmul.f32 %v2610_v28, %v187_v16  ;;  %v305_v43 = vmul.f32 %v2612_v2, %v187_v16 }
 0x150   :  { %v1125_v62 = vadd.f32 %v1061_v33, %v793_v60  ;;  %v1126_v59 = vadd.f32 %v1062_v21, %v794_v0 }
 0x151   :  { %987 = vperm.xlu1 %2054, %v2067_v8   ;;  %v3053_v29 = vpop.permute.xlu1 %421 }
 0x152   :  { %v1395_v19 = vadd.f32 %v1331_v45, %v1126_v59  ;;  %v1394_v1 = vadd.f32 %v1330_v20, %v1125_v62  ;;  %v417_v30 = vpop.permute.xlu0 %416  ;;  %v528_v63 = vadd.f32 %v3053_v29, %v304_v25  ;;  %v529_v42 = vadd.f32 %v3053_v29, %v305_v43 }
 0x153   :  { %v526_v5 = vadd.f32 %v417_v30, %v302_v46  ;;  %v527_v55 = vadd.f32 %v417_v30, %v303_v6  ;;  %v1335_v20 = vmul.f32 %v2630_v26, %v3574_v22  ;;  %v65_v30 = vld [vmem:[%s3451_s4 + $0xf8] sm:$0xff] }
 0x154   :  { %v1459_v44 = vmax.f32 %v1395_v19, 0.0  ;;  %v1458_v23 = vmax.f32 %v1394_v1, 0.0 }
 0x155   :  { %471 = vperm.xlu1 %2054, %v61_v13   ;;  %v63_v13 = vld [vmem:[%s3451_s4 + $0xe8] sm:$0xff]  ;;  %v795_v59 = vadd.f32 %v731_v4, %v526_v5  ;;  %v796_v40 = vadd.f32 %v732_v15, %v527_v55  ;;  %v3576_v4 = vld [vmem:[#allocation13_spill] sm:$0xff] }
 0x156   :  { %v630_v34 = vpop.permute.xlu1 %629  ;;  %v735_v15 = vmul.f32 %v2623_v32, %v3576_v4 }
 0x157   :  { %v733_v36 = vmul.f32 %v2623_v32, %v630_v34  ;;  %v734_v7 = vmul.f32 %v2625_v17, %v630_v34 }
 0x159   :  { %2055 = vset.pattern.permute.xlu1 %v3522_v10  ;;  %v797_v60 = vadd.f32 %v733_v36, %v528_v63  ;;  %v798_v0 = vadd.f32 %v734_v7, %v529_v42  ;;  %v2071_v36 = vld [vmem:[%s3450_s3 + $0xe8] sm:$0xff] }
 0x15a   :  { %669 = vperm.xlu1 %2055, %v3572_v11   ;;  %v1219_v58 = vpop.permute.xlu1 %1218 }
 0x15b   :  { %v1328_v50 = vmul.f32 %v2628_v53, %v1219_v58  ;;  %v1329_v49 = vmul.f32 %v2630_v26, %v1219_v58 }
 0x15d   :  { %v1392_v61 = vadd.f32 %v1328_v50, %v1123_v51  ;;  %v1393_v27 = vadd.f32 %v1329_v49, %v1124_v48  ;;  %v3575_v48 = vld [vmem:[#allocation30_spill] sm:$0xff] }
 0x15e   :  { %1258 = vperm.xlu1 %2055, %v851_v57   ;;  %v853_v57 = vld [vmem:[%s3450_s3 + $0xd0] sm:$0xff] }
 0x15f   :  { %v3076_v31 = vpop.permute.xlu1 %191  ;;  %v1457_v24 = vmax.f32 %v1393_v27, 0.0  ;;  %v1456_v52 = vmax.f32 %v1392_v61, 0.0 }
 0x160   :  { %v306_v46 = vmul.f32 %v2610_v28, %v3076_v31  ;;  %v307_v6 = vmul.f32 %v2612_v2, %v3076_v31 }
 0x161   :  { %v1954_v3 = vpack.c.bf16 %v1459_v44, %v1457_v24  ;;  %v1956_v56 = vpack.c.bf16 %v1458_v23, %v1456_v52 }
 0x162   :  { %2056 = vset.pattern.permute.xlu1 %v3525_v18 }
 0x163   :  { %241 = vperm.xlu1 %2056, %v2068_v47   ;;  %1955 = vmatprep.subr.bf16.mxu0 %v1954_v3  ;;  %v943_v38 = vpop.permute.xlu1 %942  ;;  %v2070_v47 = vld [vmem:[%s3449_s2 + $0xf0] sm:$0xff] }
 0x164   :  { %1957 = vmatpush1.bf16.msra.mxu0 %v1956_v56  ;;  %v1063_v35 = vmul.f32 %v2632_v9, %v943_v38  ;;  %v1064_v41 = vmul.f32 %v2634_v12, %v943_v38 }
 0x166   :  { %v1127_v45 = vadd.f32 %v1063_v35, %v795_v59  ;;  %v1128_v51 = vadd.f32 %v1064_v41, %v796_v40  ;;  %v736_v35 = vmul.f32 %v2625_v17, %v3576_v4  ;;  %v3577_v40 = vld [vmem:[#allocation16_spill] sm:$0xff] }
 0x167   :  { %992 = vperm.xlu1 %2056, %v853_v57   ;;  %v948_v39 = vpop.permute.xlu1 %947  ;;  %v1338_v22 = vmul.f32 %v2628_v53, %v3577_v40 }
 0x168   :  { %v1065_v33 = vmul.f32 %v2632_v9, %v948_v39  ;;  %v1066_v21 = vmul.f32 %v2634_v12, %v948_v39  ;;  %v197_v39 = vpop.permute.xlu0 %196 }
 0x169   :  { %v308_v25 = vmul.f32 %v2610_v28, %v197_v39  ;;  %v309_v43 = vmul.f32 %v2612_v2, %v197_v39 }
 0x16a   :  { %v1129_v34 = vadd.f32 %v1065_v33, %v797_v60  ;;  %v1130_v62 = vadd.f32 %v1066_v21, %v798_v0 }
 0x16b   :  { %997 = vperm.xlu1 %2056, %v2069_v37   ;;  %v3096_v8 = vpop.permute.xlu1 %431 }
 0x16c   :  { %v1399_v49 = vadd.f32 %v1335_v20, %v1130_v62  ;;  %v1398_v19 = vadd.f32 %v1334_v14, %v1129_v34  ;;  %v427_v63 = vpop.permute.xlu0 %426  ;;  %v532_v42 = vadd.f32 %v3096_v8, %v308_v25  ;;  %v533_v31 = vadd.f32 %v3096_v8, %v309_v43  ;;  %v2072_v20 = vld [vmem:[%s3449_s2 + $0xf8] sm:$0xff] }
 0x16d   :  { %v530_v5 = vadd.f32 %v427_v63, %v306_v46  ;;  %v531_v55 = vadd.f32 %v427_v63, %v307_v6  ;;  %v1339_v14 = vmul.f32 %v2630_v26, %v3577_v40 }
 0x16e   :  { %v1463_v52 = vmax.f32 %v1399_v49, 0.0  ;;  %v1462_v23 = vmax.f32 %v1398_v19, 0.0 }
 0x16f   :  { %481 = vperm.xlu1 %2056, %v63_v13   ;;  %v799_v62 = vadd.f32 %v735_v15, %v530_v5  ;;  %v800_v59 = vadd.f32 %v736_v35, %v531_v55  ;;  %v3578_v55 = vld [vmem:[#allocation15_spill] sm:$0xff] }
 0x170   :  { %v638_v29 = vpop.permute.xlu1 %637 }
 0x171   :  { %v737_v37 = vmul.f32 %v2623_v32, %v638_v29  ;;  %v738_v13 = vmul.f32 %v2625_v17, %v638_v29 }
 0x173   :  { %2057 = vset.pattern.permute.xlu1 %v3522_v10  ;;  %v801_v60 = vadd.f32 %v737_v37, %v532_v42  ;;  %v802_v0 = vadd.f32 %v738_v13, %v533_v31 }
 0x174   :  { %677 = vperm.xlu1 %2057, %v3575_v48   ;;  %v1227_v11 = vpop.permute.xlu1 %1226 }
 0x175   :  { %v1332_v58 = vmul.f32 %v2628_v53, %v1227_v11  ;;  %v1333_v50 = vmul.f32 %v2630_v26, %v1227_v11 }
 0x177   :  { %v1396_v1 = vadd.f32 %v1332_v58, %v1127_v45  ;;  %v1397_v61 = vadd.f32 %v1333_v50, %v1128_v51 }
 0x178   :  { %1266 = vperm.xlu1 %2057, %v853_v57   ;;  %v855_v57 = vld [vmem:[%s3450_s3 + $0xe0] sm:$0xff] }
 0x179   :  { %v1460_v27 = vmax.f32 %v1396_v1, 0.0  ;;  %v1461_v24 = vmax.f32 %v1397_v61, 0.0  ;;  %v3119_v44 = vpop.permute.xlu1 %201 }
 0x17a   :  { %v310_v43 = vmul.f32 %v2610_v28, %v3119_v44  ;;  %v311_v46 = vmul.f32 %v2612_v2, %v3119_v44 }
 0x17b   :  { %v1958_v3 = vpack.c.bf16 %v1463_v52, %v1461_v24  ;;  %v1960_v56 = vpack.c.bf16 %v1462_v23, %v1460_v27  ;;  %v857_v52 = vld [vmem:[%s3450_s3 + $0xf0] sm:$0xff] }
 0x17c   :  { %2058 = vset.pattern.permute.xlu1 %v3525_v18 }
 0x17d   :  { %251 = vperm.xlu1 %2058, %v2070_v47   ;;  %1959 = vmatprep.subr.bf16.mxu0 %v1958_v3  ;;  %v953_v38 = vpop.permute.xlu1 %952 }
 0x17e   :  { %1961 = vmatpush1.bf16.msra.mxu0 %v1960_v56  ;;  %v1067_v41 = vmul.f32 %v2632_v9, %v953_v38  ;;  %v1068_v8 = vmul.f32 %v2634_v12, %v953_v38 }
 0x180   :  { %v1131_v45 = vadd.f32 %v1067_v41, %v799_v62  ;;  %v1132_v51 = vadd.f32 %v1068_v8, %v800_v59 }
 0x181   :  { %1002 = vperm.xlu1 %2058, %v855_v57   ;;  %v958_v16 = vpop.permute.xlu1 %957 }
 0x182   :  { %v1069_v33 = vmul.f32 %v2632_v9, %v958_v16  ;;  %v1070_v21 = vmul.f32 %v2634_v12, %v958_v16 }
 0x184   :  { %v1133_v29 = vadd.f32 %v1069_v33, %v801_v60  ;;  %v1134_v34 = vadd.f32 %v1070_v21, %v802_v0  ;;  %v739_v60 = vmul.f32 %v2623_v32, %v3578_v55  ;;  %v740_v0 = vmul.f32 %v2625_v17, %v3578_v55 }
 0x185   :  { %1007 = vperm.xlu1 %2058, %v2071_v36   ;;  %v3137_v7 = vpop.permute.xlu1 %441 }
 0x186   :  { %v1402_v11 = vadd.f32 %v1338_v22, %v1133_v29  ;;  %v1403_v58 = vadd.f32 %v1339_v14, %v1134_v34  ;;  %v3579_v29 = vld [vmem:[#allocation18_spill] sm:$0xff] }
 0x187   :  { %v1342_v34 = vmul.f32 %v2628_v53, %v3579_v29  ;;  %v1493_v22 = vld [vmem:[%s3452_s5 + $0x8] sm:$0xff] }
 0x188   :  { %v1467_v23 = vmax.f32 %v1403_v58, 0.0  ;;  %v1466_v3 = vmax.f32 %v1402_v11, 0.0  ;;  %1684 = vmatprep.mubr.f32.mxu0 %v1493_v22 }
 0x189   :  { %491 = vperm.xlu1 %2058, %v65_v30  }
 0x18a   :  { %v646_v54 = vpop.permute.xlu1 %645 }
 0x18b   :  { %v741_v6 = vmul.f32 %v2623_v32, %v646_v54  ;;  %v742_v36 = vmul.f32 %v2625_v17, %v646_v54 }
 0x18d   :  { %2059 = vset.pattern.permute.xlu1 %v3522_v10 }
 0x18e   :  { %685 = vperm.xlu1 %2059, %v2072_v20   ;;  %v1235_v48 = vpop.permute.xlu1 %1234 }
 0x18f   :  { %v1336_v50 = vmul.f32 %v2628_v53, %v1235_v48  ;;  %v1337_v49 = vmul.f32 %v2630_v26, %v1235_v48 }
 0x191   :  { %v1400_v19 = vadd.f32 %v1336_v50, %v1131_v45  ;;  %v1401_v1 = vadd.f32 %v1337_v49, %v1132_v51 }
 0x192   :  { %1274 = vperm.xlu1 %2059, %v855_v57   ;;  %v207_v57 = vpop.permute.xlu0 %206 }
 0x193   :  { %v1464_v61 = vmax.f32 %v1400_v19, 0.0  ;;  %v1465_v27 = vmax.f32 %v1401_v1, 0.0  ;;  %v312_v39 = vmul.f32 %v2610_v28, %v207_v57  ;;  %v313_v25 = vmul.f32 %v2612_v2, %v207_v57 }
 0x194   :  { %v3164_v24 = vpop.permute.xlu1 %211 }
 0x195   :  { %v1962_v56 = vpack.c.bf16 %v1467_v23, %v1465_v27  ;;  %v1964_v47 = vpack.c.bf16 %v1466_v3, %v1464_v61  ;;  %v536_v30 = vadd.f32 %v3137_v7, %v312_v39  ;;  %v537_v63 = vadd.f32 %v3137_v7, %v313_v25 }
 0x196   :  { %2061 = vset.pattern.permute.xlu1 %v3525_v18  ;;  %v437_v13 = vpop.permute.xlu0 %436 }
 0x197   :  { %1012 = vperm.xlu1 %2061, %v857_v52   ;;  %1963 = vmatprep.subr.bf16.mxu0 %v1962_v56  ;;  %v534_v44 = vadd.f32 %v437_v13, %v310_v43  ;;  %v535_v33 = vadd.f32 %v437_v13, %v311_v46  ;;  %v805_v21 = vadd.f32 %v741_v6, %v536_v30 }
 0x198   :  { %v963_v38 = vpop.permute.xlu1 %962  ;;  %1965 = vmatpush1.bf16.msra.mxu0 %v1964_v47  ;;  %v806_v5 = vadd.f32 %v742_v36, %v537_v63  ;;  %v314_v56 = vmul.f32 %v2610_v28, %v3164_v24  ;;  %v315_v47 = vmul.f32 %v2612_v2, %v3164_v24 }
 0x199   :  { %v1071_v54 = vmul.f32 %v2632_v9, %v963_v38  ;;  %v1072_v7 = vmul.f32 %v2634_v12, %v963_v38  ;;  %v803_v41 = vadd.f32 %v739_v60, %v534_v44  ;;  %v804_v8 = vadd.f32 %v740_v0, %v535_v33 }
 0x19a   :  { %v217_v23 = vpop.permute.xlu0 %216 }
 0x19b   :  { %2062 = vset.pattern.permute.xlu1 %v3522_v10  ;;  %v2073_v10 = vld [vmem:[%s3450_s3 + $0xf8] sm:$0xff]  ;;  %v1135_v62 = vadd.f32 %v1071_v54, %v803_v41  ;;  %v1136_v59 = vadd.f32 %v1072_v7, %v804_v8  ;;  %v316_v38 = vmul.f32 %v2610_v28, %v217_v23  ;;  %v317_v57 = vmul.f32 %v2612_v2, %v217_v23 }
 0x19c   :  { %1282 = vperm.xlu1 %2062, %v857_v52   ;;  %v968_v16 = vpop.permute.xlu1 %967  ;;  %v3581_v54 = vld [vmem:[#allocation20_spill] sm:$0xff] }
 0x19d   :  { %v1073_v42 = vmul.f32 %v2632_v9, %v968_v16  ;;  %v1074_v31 = vmul.f32 %v2634_v12, %v968_v16  ;;  %v1346_v7 = vmul.f32 %v2628_v53, %v3581_v54 }
 0x19e   :  { %v447_v43 = vpop.permute.xlu0 %446 }
 0x19f   :  { %v1137_v15 = vadd.f32 %v1073_v42, %v805_v21  ;;  %v1138_v35 = vadd.f32 %v1074_v31, %v806_v5  ;;  %v538_v13 = vadd.f32 %v447_v43, %v314_v56  ;;  %v539_v30 = vadd.f32 %v447_v43, %v315_v47  ;;  %v3580_v42 = vld [vmem:[#allocation17_spill] sm:$0xff] }
 0x1a0   :  { %1286 = vperm.xlu1 %2062, %v2073_v10   ;;  %v452_v37 = vpop.permute.xlu1 %451  ;;  %v743_v31 = vmul.f32 %v2623_v32, %v3580_v42  ;;  %v744_v44 = vmul.f32 %v2625_v17, %v3580_v42 }
 0x1a1   :  { %v1406_v14 = vadd.f32 %v1342_v34, %v1137_v15  ;;  %v540_v46 = vadd.f32 %v452_v37, %v316_v38  ;;  %v541_v6 = vadd.f32 %v452_v37, %v317_v57 }
 0x1a2   :  { %v807_v60 = vadd.f32 %v743_v31, %v538_v13  ;;  %v808_v0 = vadd.f32 %v744_v44, %v539_v30  ;;  %v3583_v44 = vld [vmem:[#allocation22_spill] sm:$0xff] }
 0x1a3   :  { %v1470_v1 = vmax.f32 %v1406_v14, 0.0 }
 0x1a4   :  { %2063 = vset.pattern.permute.xlu1 %v3525_v18  ;;  %v1343_v18 = vmul.f32 %v2630_v26, %v3579_v29 }
 0x1a5   :  { %v654_v4 = vpop.permute.xlu1 %653 }
 0x1a6   :  { %v1407_v20 = vadd.f32 %v1343_v18, %v1138_v35  ;;  %v745_v16 = vmul.f32 %v2623_v32, %v654_v4  ;;  %v746_v39 = vmul.f32 %v2625_v17, %v654_v4  ;;  %v1347_v4 = vmul.f32 %v2630_v26, %v3581_v54 }
 0x1a8   :  { %v1471_v19 = vmax.f32 %v1407_v20, 0.0  ;;  %v809_v63 = vadd.f32 %v745_v16, %v540_v46  ;;  %v810_v24 = vadd.f32 %v746_v39, %v541_v6  ;;  %v3582_v6 = vld [vmem:[#allocation19_spill] sm:$0xff] }
 0x1a9   :  { %v1243_v40 = vpop.permute.xlu1 %1242 }
 0x1aa   :  { %v1340_v45 = vmul.f32 %v2628_v53, %v1243_v40  ;;  %v1341_v51 = vmul.f32 %v2630_v26, %v1243_v40 }
 0x1ac   :  { %v1404_v48 = vadd.f32 %v1340_v45, %v1135_v62  ;;  %v1405_v11 = vadd.f32 %v1341_v51, %v1136_v59 }
 0x1ae   :  { %v1468_v58 = vmax.f32 %v1404_v48, 0.0  ;;  %v1469_v50 = vmax.f32 %v1405_v11, 0.0  ;;  %v222_v49 = vpop.permute.xlu1 %221 }
 0x1b0   :  { %v1966_v61 = vpack.c.bf16 %v1471_v19, %v1469_v50  ;;  %v1968_v27 = vpack.c.bf16 %v1470_v1, %v1468_v58  ;;  %v227_v58 = vpop.permute.xlu0 %226  ;;  %v318_v19 = vmul.f32 %v2610_v28, %v222_v49  ;;  %v319_v1 = vmul.f32 %v2612_v2, %v222_v49 }
 0x1b2   :  { %1967 = vmatprep.subr.bf16.mxu0 %v1966_v61  ;;  %v973_v52 = vpop.permute.xlu1 %972  ;;  %v320_v61 = vmul.f32 %v2610_v28, %v227_v58 }
 0x1b3   :  { %1969 = vmatpush1.bf16.msra.mxu0 %v1968_v27  ;;  %v1075_v33 = vmul.f32 %v2632_v9, %v973_v52  ;;  %v1076_v21 = vmul.f32 %v2634_v12, %v973_v52  ;;  %v321_v27 = vmul.f32 %v2612_v2, %v227_v58 }
 0x1b4   :  { %v457_v56 = vpop.permute.xlu0 %456 }
 0x1b5   :  { %v1139_v15 = vadd.f32 %v1075_v33, %v807_v60  ;;  %v1140_v35 = vadd.f32 %v1076_v21, %v808_v0  ;;  %v542_v39 = vadd.f32 %v457_v56, %v318_v19  ;;  %v543_v43 = vadd.f32 %v457_v56, %v319_v1 }
 0x1b6   :  { %v978_v3 = vpop.permute.xlu1 %977  ;;  %v1350_v33 = vmul.f32 %v2628_v53, %v3583_v44  ;;  %v1351_v21 = vmul.f32 %v2630_v26, %v3583_v44 }
 0x1b7   :  { %v1077_v36 = vmul.f32 %v2632_v9, %v978_v3  ;;  %v1078_v10 = vmul.f32 %v2634_v12, %v978_v3 }
 0x1b9   :  { %v1141_v37 = vadd.f32 %v1077_v36, %v809_v63  ;;  %v1142_v55 = vadd.f32 %v1078_v10, %v810_v24  ;;  %v747_v36 = vmul.f32 %v2623_v32, %v3582_v6  ;;  %v748_v10 = vmul.f32 %v2625_v17, %v3582_v6 }
 0x1ba   :  { %v462_v25 = vpop.permute.xlu1 %461 }
 0x1bb   :  { %v1410_v8 = vadd.f32 %v1346_v7, %v1141_v37  ;;  %v1411_v29 = vadd.f32 %v1347_v4, %v1142_v55  ;;  %v544_v47 = vadd.f32 %v462_v25, %v320_v61  ;;  %v545_v38 = vadd.f32 %v462_v25, %v321_v27  ;;  %v1529_v61 = vld [vmem:[%s3453_s6 + $0x28] sm:$0xff] }
 0x1bc   :  { %v811_v42 = vadd.f32 %v747_v36, %v542_v39  ;;  %v812_v31 = vadd.f32 %v748_v10, %v543_v43  ;;  %v1531_v39 = vld [vmem:[%s3453_s6 + $0x38] sm:$0xff] }
 0x1bd   :  { %v1475_v20 = vmax.f32 %v1411_v29, 0.0  ;;  %v1474_v45 = vmax.f32 %v1410_v8, 0.0  ;;  %v3584_v43 = vld [vmem:[#allocation21_spill] sm:$0xff] }
 0x1bf   :  { %v662_v5 = vpop.permute.xlu1 %661 }
 0x1c0   :  { %v749_v52 = vmul.f32 %v2623_v32, %v662_v5  ;;  %v750_v23 = vmul.f32 %v2625_v17, %v662_v5 }
 0x1c2   :  { %v813_v46 = vadd.f32 %v749_v52, %v544_v47  ;;  %v814_v49 = vadd.f32 %v750_v23, %v545_v38 }
 0x1c3   :  { %v1251_v41 = vpop.permute.xlu1 %1250 }
 0x1c4   :  { %v1344_v34 = vmul.f32 %v2628_v53, %v1251_v41  ;;  %v1345_v18 = vmul.f32 %v2630_v26, %v1251_v41 }
 0x1c6   :  { %v1408_v62 = vadd.f32 %v1344_v34, %v1139_v15  ;;  %v1409_v59 = vadd.f32 %v1345_v18, %v1140_v35 }
 0x1c8   :  { %v1472_v40 = vmax.f32 %v1408_v62, 0.0  ;;  %v1473_v22 = vmax.f32 %v1409_v59, 0.0  ;;  %v232_v14 = vpop.permute.xlu1 %231 }
 0x1ca   :  { %v1970_v51 = vpack.c.bf16 %v1475_v20, %v1473_v22  ;;  %v1972_v48 = vpack.c.bf16 %v1474_v45, %v1472_v40  ;;  %v1525_v40 = vld [vmem:[%s3453_s6 + $0x8] sm:$0xff]  ;;  %v237_v22 = vpop.permute.xlu0 %236  ;;  %v1527_v45 = vld [vmem:[%s3453_s6 + $0x18] sm:$0xff] }
 0x1cb   :  { %1547 = vperm.xlu1 %2063, %v1525_v40   ;;  %v325_v58 = vmul.f32 %v2612_v2, %v237_v22  ;;  %v1539_v40 = vld [vmem:[%s3453_s6 + $0x78] sm:$0xff] }
 0x1cc   :  { %1971 = vmatprep.subr.bf16.mxu0 %v1970_v51  ;;  %v983_v11 = vpop.permute.xlu1 %982  ;;  %v322_v51 = vmul.f32 %v2610_v28, %v232_v14 }
 0x1cd   :  { %1973 = vmatpush1.bf16.msra.mxu0 %v1972_v48  ;;  %v1079_v13 = vmul.f32 %v2632_v9, %v983_v11  ;;  %v1080_v30 = vmul.f32 %v2634_v12, %v983_v11  ;;  %v323_v48 = vmul.f32 %v2612_v2, %v232_v14  ;;  %v324_v11 = vmul.f32 %v2610_v28, %v237_v22 }
 0x1ce   :  { %v467_v27 = vpop.permute.xlu0 %466 }
 0x1cf   :  { %v1143_v5 = vadd.f32 %v1079_v13, %v811_v42  ;;  %v1144_v37 = vadd.f32 %v1080_v30, %v812_v31  ;;  %1557 = vperm.xlu1 %2063, %v1527_v45   ;;  %v546_v47 = vadd.f32 %v467_v27, %v322_v51  ;;  %v547_v38 = vadd.f32 %v467_v27, %v323_v48  ;;  %v1533_v31 = vld [vmem:[%s3453_s6 + $0x48] sm:$0xff] }
 0x1d0   :  { %v988_v50 = vpop.permute.xlu1 %987 }
 0x1d1   :  { %v1081_v57 = vmul.f32 %v2632_v9, %v988_v50  ;;  %v1082_v16 = vmul.f32 %v2634_v12, %v988_v50 }
 0x1d2   :  { %v247_v22 = vpop.permute.xlu0 %246 }
 0x1d3   :  { %v1145_v25 = vadd.f32 %v1081_v57, %v813_v46  ;;  %v1146_v24 = vadd.f32 %v1082_v16, %v814_v49  ;;  %1567 = vperm.xlu1 %2063, %v1529_v61   ;;  %v751_v46 = vmul.f32 %v2623_v32, %v3584_v43  ;;  %v752_v49 = vmul.f32 %v2625_v17, %v3584_v43 }
 0x1d4   :  { %v472_v3 = vpop.permute.xlu1 %471  ;;  %v328_v48 = vmul.f32 %v2610_v28, %v247_v22 }
 0x1d5   :  { %v1414_v60 = vadd.f32 %v1350_v33, %v1145_v25  ;;  %v1415_v0 = vadd.f32 %v1351_v21, %v1146_v24  ;;  %v548_v52 = vadd.f32 %v472_v3, %v324_v11  ;;  %v549_v23 = vadd.f32 %v472_v3, %v325_v58  ;;  %v3585_v25 = vld [vmem:[#allocation25_spill] sm:$0xff] }
 0x1d6   :  { %v815_v30 = vadd.f32 %v751_v46, %v546_v47  ;;  %v1354_v24 = vmul.f32 %v2628_v53, %v3585_v25  ;;  %v1355_v42 = vmul.f32 %v2630_v26, %v3585_v25  ;;  %v329_v11 = vmul.f32 %v2612_v2, %v247_v22  ;;  %v477_v61 = vpop.permute.xlu0 %476 }
 0x1d7   :  { %v1479_v29 = vmax.f32 %v1415_v0, 0.0  ;;  %v1478_v34 = vmax.f32 %v1414_v60, 0.0  ;;  %1577 = vperm.xlu1 %2063, %v1531_v39  }
 0x1d9   :  { %v670_v63 = vpop.permute.xlu1 %669 }
 0x1da   :  { %v753_v50 = vmul.f32 %v2623_v32, %v670_v63  ;;  %v754_v19 = vmul.f32 %v2625_v17, %v670_v63  ;;  %v816_v63 = vadd.f32 %v752_v49, %v547_v38 }
 0x1db   :  { %1587 = vperm.xlu1 %2063, %v1533_v31  }
 0x1dc   :  { %v817_v57 = vadd.f32 %v753_v50, %v548_v52  ;;  %v818_v16 = vadd.f32 %v754_v19, %v549_v23 }
 0x1dd   :  { %v1259_v55 = vpop.permute.xlu1 %1258 }
 0x1de   :  { %v1348_v54 = vmul.f32 %v2628_v53, %v1259_v55  ;;  %v1349_v7 = vmul.f32 %v2630_v26, %v1259_v55 }
 0x1e0   :  { %v1412_v4 = vadd.f32 %v1348_v54, %v1143_v5  ;;  %v1413_v15 = vadd.f32 %v1349_v7, %v1144_v37  ;;  %v1535_v7 = vld [vmem:[%s3453_s6 + $0x58] sm:$0xff] }
 0x1e1   :  { %1597 = vperm.xlu1 %2063, %v1535_v7  }
 0x1e2   :  { %v1476_v35 = vmax.f32 %v1412_v4, 0.0  ;;  %v1477_v41 = vmax.f32 %v1413_v15, 0.0  ;;  %v3244_v8 = vpop.permute.xlu1 %241 }
 0x1e3   :  { %v326_v45 = vmul.f32 %v2610_v28, %v3244_v8  ;;  %v327_v51 = vmul.f32 %v2612_v2, %v3244_v8 }
 0x1e4   :  { %v1974_v18 = vpack.c.bf16 %v1479_v29, %v1477_v41  ;;  %v1976_v62 = vpack.c.bf16 %v1478_v34, %v1476_v35 }
 0x1e5   :  { %v551_v8 = vadd.f32 %v477_v61, %v327_v51  ;;  %v3588_v51 = vld [vmem:[#allocation27_spill] sm:$0xff] }
 0x1e6   :  { %1975 = vmatprep.subr.bf16.mxu0 %v1974_v18  ;;  %v993_v59 = vpop.permute.xlu1 %992 }
 0x1e7   :  { %1977 = vmatpush1.bf16.msra.mxu0 %v1976_v62  ;;  %v1083_v3 = vmul.f32 %v2632_v9, %v993_v59  ;;  %v1084_v6 = vmul.f32 %v2634_v12, %v993_v59  ;;  %v1537_v62 = vld [vmem:[%s3453_s6 + $0x68] sm:$0xff] }
 0x1e8   :  { %1607 = vperm.xlu1 %2063, %v1537_v62  }
 0x1e9   :  { %v1147_v44 = vadd.f32 %v1083_v3, %v815_v30  ;;  %v1148_v33 = vadd.f32 %v1084_v6, %v816_v63  ;;  %v257_v63 = vpop.permute.xlu0 %256 }
 0x1ea   :  { %v998_v20 = vpop.permute.xlu1 %997 }
 0x1eb   :  { %v1085_v14 = vmul.f32 %v2632_v9, %v998_v20  ;;  %v1086_v56 = vmul.f32 %v2634_v12, %v998_v20 }
 0x1ec   :  { %1617 = vperm.xlu1 %2063, %v1539_v40  }
 0x1ed   :  { %v1149_v10 = vadd.f32 %v1085_v14, %v817_v57  ;;  %v1150_v13 = vadd.f32 %v1086_v56, %v818_v16  ;;  %v550_v56 = vadd.f32 %v477_v61, %v326_v45  ;;  %v3586_v57 = vld [vmem:[#allocation24_spill] sm:$0xff] }
 0x1ee   :  { %v3258_v1 = vpop.permute.xlu1 %481  ;;  %v755_v16 = vmul.f32 %v2623_v32, %v3586_v57  ;;  %v756_v39 = vmul.f32 %v2625_v17, %v3586_v57 }
 0x1ef   :  { %v1418_v5 = vadd.f32 %v1354_v24, %v1149_v10  ;;  %v1419_v37 = vadd.f32 %v1355_v42, %v1150_v13  ;;  %v552_v27 = vadd.f32 %v3258_v1, %v328_v48  ;;  %v553_v52 = vadd.f32 %v3258_v1, %v329_v11  ;;  %v3587_v10 = vld [vmem:[#allocation28_spill] sm:$0xff] }
 0x1f0   :  { %v819_v6 = vadd.f32 %v755_v16, %v550_v56  ;;  %v1358_v13 = vmul.f32 %v2628_v53, %v3587_v10  ;;  %v1359_v30 = vmul.f32 %v2630_v26, %v3587_v10  ;;  %v759_v48 = vmul.f32 %v2623_v32, %v3588_v51 }
 0x1f1   :  { %v1483_v41 = vmax.f32 %v1419_v37, 0.0  ;;  %v1482_v29 = vmax.f32 %v1418_v5, 0.0  ;;  %v760_v11 = vmul.f32 %v2625_v17, %v3588_v51 }
 0x1f3   :  { %v678_v36 = vpop.permute.xlu1 %677 }
 0x1f4   :  { %v757_v58 = vmul.f32 %v2623_v32, %v678_v36  ;;  %v758_v50 = vmul.f32 %v2625_v17, %v678_v36  ;;  %v820_v36 = vadd.f32 %v756_v39, %v551_v8 }
 0x1f6   :  { %v821_v47 = vadd.f32 %v757_v58, %v552_v27  ;;  %v822_v38 = vadd.f32 %v758_v50, %v553_v52 }
 0x1f7   :  { %v1267_v21 = vpop.permute.xlu1 %1266 }
 0x1f8   :  { %v1352_v55 = vmul.f32 %v2628_v53, %v1267_v21  ;;  %v1353_v60 = vmul.f32 %v2630_v26, %v1267_v21 }
 0x1fa   :  { %v1416_v0 = vadd.f32 %v1352_v55, %v1147_v44  ;;  %v1417_v54 = vadd.f32 %v1353_v60, %v1148_v33 }
 0x1fc   :  { %v1480_v4 = vmax.f32 %v1416_v0, 0.0  ;;  %v1481_v15 = vmax.f32 %v1417_v54, 0.0  ;;  %v252_v35 = vpop.permute.xlu1 %251  ;;  %v487_v0 = vpop.permute.xlu0 %486 }
 0x1fd   :  { %v330_v5 = vmul.f32 %v2610_v28, %v252_v35  ;;  %v331_v37 = vmul.f32 %v2612_v2, %v252_v35 }
 0x1fe   :  { %v1978_v34 = vpack.c.bf16 %v1483_v41, %v1481_v15  ;;  %v1980_v18 = vpack.c.bf16 %v1482_v29, %v1480_v4  ;;  %v332_v29 = vmul.f32 %v2610_v28, %v257_v63 }
 0x1ff   :  { %v555_v40 = vadd.f32 %v487_v0, %v331_v37  ;;  %v1507_v37 = vld [vmem:[%s3452_s5 + $0x78] sm:$0xff] }
 0x200   :  { %1979 = vmatprep.subr.bf16.mxu0 %v1978_v34  ;;  %v1003_v59 = vpop.permute.xlu1 %1002  ;;  %v333_v34 = vmul.f32 %v2612_v2, %v257_v63  ;;  %v1018_v27 = vpop.permute.xlu0 %1017  ;;  %v1496_v63 = vld [vmem:[%s3452_s5 + $0x20] sm:$0xff] }
 0x201   :  { %1981 = vmatpush1.bf16.msra.mxu0 %v1980_v18  ;;  %v1087_v43 = vmul.f32 %v2632_v9, %v1003_v59  ;;  %v1088_v46 = vmul.f32 %v2634_v12, %v1003_v59  ;;  %v554_v59 = vadd.f32 %v487_v0, %v330_v5  ;;  %v1504_v5 = vld [vmem:[%s3452_s5 + $0x60] sm:$0xff] }
 0x202   :  { %v1508_v0 = vld [vmem:[%s3452_s5 + $0x80] sm:$0xff] }
 0x203   :  { %v1151_v25 = vadd.f32 %v1087_v43, %v819_v6  ;;  %v1152_v24 = vadd.f32 %v1088_v46, %v820_v36  ;;  %v823_v52 = vadd.f32 %v759_v48, %v554_v59  ;;  %v1518_v59 = vld [vmem:[%s3452_s5 + $0xd0] sm:$0xff] }
 0x204   :  { %v1008_v20 = vpop.permute.xlu1 %1007 }
 0x205   :  { %v1089_v23 = vmul.f32 %v2632_v9, %v1008_v20  ;;  %v1090_v14 = vmul.f32 %v2634_v12, %v1008_v20 }
 0x207   :  { %v1153_v1 = vadd.f32 %v1089_v23, %v821_v47  ;;  %v1154_v3 = vadd.f32 %v1090_v14, %v822_v38  ;;  %v824_v23 = vadd.f32 %v760_v11, %v555_v40  ;;  %v1521_v40 = vld [vmem:[%s3452_s5 + $0xe8] sm:$0xff]  ;;  %v1543_v11 = vpop.permute.xlu0 %1542 }
 0x208   :  { %v492_v19 = vpop.permute.xlu1 %491 }
 0x209   :  { %v1422_v31 = vadd.f32 %v1358_v13, %v1153_v1  ;;  %v1423_v44 = vadd.f32 %v1359_v30, %v1154_v3  ;;  %v556_v20 = vadd.f32 %v492_v19, %v332_v29  ;;  %v557_v45 = vadd.f32 %v492_v19, %v333_v34  ;;  %v1497_v30 = vld [vmem:[%s3452_s5 + $0x28] sm:$0xff]  ;;  %v1514_v29 = vld [vmem:[%s3452_s5 + $0xb0] sm:$0xff] }
 0x20a   :  { %v1517_v34 = vld [vmem:[%s3452_s5 + $0xc8] sm:$0xff] }
 0x20b   :  { %v1487_v15 = vmax.f32 %v1423_v44, 0.0  ;;  %v1486_v41 = vmax.f32 %v1422_v31, 0.0  ;;  %v1500_v31 = vld [vmem:[%s3452_s5 + $0x40] sm:$0xff]  ;;  %v1503_v44 = vld [vmem:[%s3452_s5 + $0x58] sm:$0xff] }
 0x20d   :  { %v686_v49 = vpop.permute.xlu1 %685 }
 0x20e   :  { %v761_v18 = vmul.f32 %v2623_v32, %v686_v49  ;;  %v762_v62 = vmul.f32 %v2625_v17, %v686_v49  ;;  %v1093_v32 = vmul.f32 %v2632_v9, %v1018_v27  ;;  %v1094_v17 = vmul.f32 %v2634_v12, %v1018_v27 }
 0x210   :  { %v825_v58 = vadd.f32 %v761_v18, %v556_v20  ;;  %v826_v50 = vadd.f32 %v762_v62, %v557_v45  ;;  %v1516_v18 = vld [vmem:[%s3452_s5 + $0xc0] sm:$0xff]  ;;  %v1519_v62 = vld [vmem:[%s3452_s5 + $0xd8] sm:$0xff]  ;;  %v1522_v20 = vld [vmem:[%s3452_s5 + $0xf0] sm:$0xff]  ;;  %v2100_v45 = vmov 0.0  }
 0x211   :  { %v1275_v42 = vpop.permute.xlu1 %1274  ;;  %1880 = vmatprep.mubr.f32.mxu1 %v2100_v45 }
 0x212   :  { %v1356_v33 = vmul.f32 %v2628_v53, %v1275_v42  ;;  %v1357_v21 = vmul.f32 %v2630_v26, %v1275_v42  ;;  %v1157_v47 = vadd.f32 %v1093_v32, %v825_v58  ;;  %v1158_v38 = vadd.f32 %v1094_v17, %v826_v50  ;;  %v1501_v42 = vld [vmem:[%s3452_s5 + $0x48] sm:$0xff] }
 0x214   :  { %v1420_v55 = vadd.f32 %v1356_v33, %v1151_v25  ;;  %v1421_v60 = vadd.f32 %v1357_v21, %v1152_v24  ;;  %v1499_v25 = vld [vmem:[%s3452_s5 + $0x38] sm:$0xff]  ;;  %v1498_v24 = vld [vmem:[%s3452_s5 + $0x30] sm:$0xff]  ;;  %v1505_v21 = vld [vmem:[%s3452_s5 + $0x68] sm:$0xff] }
 0x215   :  { %v1502_v33 = vld [vmem:[%s3452_s5 + $0x50] sm:$0xff] }
 0x216   :  { %v1484_v54 = vmax.f32 %v1420_v55, 0.0  ;;  %v1485_v7 = vmax.f32 %v1421_v60, 0.0  ;;  %v1013_v4 = vpop.permute.xlu1 %1012  ;;  %v1506_v55 = vld [vmem:[%s3452_s5 + $0x70] sm:$0xff]  ;;  %v1509_v60 = vld [vmem:[%s3452_s5 + $0x88] sm:$0xff] }
 0x217   :  { %v1091_v28 = vmul.f32 %v2632_v9, %v1013_v4  ;;  %v1092_v2 = vmul.f32 %v2634_v12, %v1013_v4  ;;  %v1492_v12 = vld [vmem:[%s3452_s5] sm:$0xff]  ;;  %v1513_v4 = vld [vmem:[%s3452_s5 + $0xa8] sm:$0xff] }
 0x218   :  { %v1982_v22 = vpack.c.bf16 %v1487_v15, %v1485_v7  ;;  %v1984_v35 = vpack.c.bf16 %v1486_v41, %v1484_v54  ;;  %v1511_v54 = vld [vmem:[%s3452_s5 + $0x98] sm:$0xff]  ;;  %v1510_v7 = vld [vmem:[%s3452_s5 + $0x90] sm:$0xff]  ;;  %v1512_v15 = vld [vmem:[%s3452_s5 + $0xa0] sm:$0xff] }
 0x219   :  { %v1155_v56 = vadd.f32 %v1091_v28, %v823_v52  ;;  %v1156_v8 = vadd.f32 %v1092_v2, %v824_v23  ;;  %v1515_v41 = vld [vmem:[%s3452_s5 + $0xb8] sm:$0xff] }
 0x21a   :  { %1983 = vmatprep.subr.bf16.mxu0 %v1982_v22  ;;  %v1520_v22 = vld [vmem:[%s3452_s5 + $0xe0] sm:$0xff] }
 0x21b   :  { %1985 = vmatpush1.bf16.msra.mxu0 %v1984_v35  ;;  %v1283_v61 = vpop.permute.xlu1 %1282  ;;  %v1523_v35 = vld [vmem:[%s3452_s5 + $0xf8] sm:$0xff] }
 0x21c   :  { %v1360_v19 = vmul.f32 %v2628_v53, %v1283_v61  ;;  %v1361_v14 = vmul.f32 %v2630_v26, %v1283_v61 }
 0x21e   :  { %v1424_v16 = vadd.f32 %v1360_v19, %v1155_v56  ;;  %v1425_v39 = vadd.f32 %v1361_v14, %v1156_v8 }
 0x21f   :  { %v1287_v57 = vpop.permute.xlu1 %1286 }
 0x220   :  { %v1362_v43 = vmul.f32 %v2628_v53, %v1287_v57  ;;  %v1363_v46 = vmul.f32 %v2630_v26, %v1287_v57  ;;  %v1488_v3 = vmax.f32 %v1424_v16, 0.0  ;;  %v1489_v6 = vmax.f32 %v1425_v39, 0.0  ;;  %v1495_v53 = vld [vmem:[%s3452_s5 + $0x18] sm:$0xff]  ;;  %v1494_v26 = vld [vmem:[%s3452_s5 + $0x10] sm:$0xff] }
 0x222   :  { %v1426_v49 = vadd.f32 %v1362_v43, %v1157_v47  ;;  %v1427_v1 = vadd.f32 %v1363_v46, %v1158_v38  ;;  %v1553_v47 = vpop.permute.xlu0 %1552 }
 0x224   :  { %v1490_v36 = vmax.f32 %v1426_v49, 0.0  ;;  %v1491_v10 = vmax.f32 %v1427_v1, 0.0 }
 0x226   :  { %v1986_v9 = vpack.c.bf16 %v1491_v10, %v1489_v6  ;;  %v1988_v13 = vpack.c.bf16 %v1490_v36, %v1488_v3 }
 0x228   :  { %1987 = vmatprep.subr.bf16.mxu0 %v1986_v9 }
 0x229   :  { %1989 = vmatpush1.bf16.msra.mxu0 %v1988_v13 }
 0x22c   :  { %1685 = vmatmul.mubr.f32.vlgmr.msra.gmra.mrb[0].mxu0 %v1492_v12 }
 0x22d   :  { %1690 = vmatprep.mubr.f32.mxu0 %v1495_v53  ;;  %v1563_v53 = vpop.permute.xlu0 %1562 }
 0x230   :  { %1691 = vmatmul.mubr.f32.gmra.mrb[2].mxu0 %v1494_v26 }
 0x231   :  { %1696 = vmatprep.mubr.f32.mxu0 %v1497_v30 }
 0x234   :  { %1697 = vmatmul.mubr.f32.gmra.mrb[4].mxu0 %v1496_v63 }
 0x235   :  { %1702 = vmatprep.mubr.f32.mxu0 %v1499_v25 }
 0x238   :  { %1703 = vmatmul.mubr.f32.gmra.mrb[6].mxu0 %v1498_v24 }
 0x239   :  { %1708 = vmatprep.mubr.f32.mxu0 %v1501_v42 }
 0x23c   :  { %1709 = vmatmul.mubr.f32.gmra.mrb[8].mxu0 %v1500_v31 }
 0x23d   :  { %1714 = vmatprep.mubr.f32.mxu0 %v1503_v44 }
 0x240   :  { %1715 = vmatmul.mubr.f32.gmra.mrb[10].mxu0 %v1502_v33 }
 0x241   :  { %1720 = vmatprep.mubr.f32.mxu0 %v1505_v21 }
 0x244   :  { %1721 = vmatmul.mubr.f32.gmra.mrb[12].mxu0 %v1504_v5 }
 0x245   :  { %1726 = vmatprep.mubr.f32.mxu0 %v1507_v37 }
 0x248   :  { %1727 = vmatmul.mubr.f32.gmra.mrb[14].mxu0 %v1506_v55 }
 0x249   :  { %1732 = vmatprep.mubr.f32.mxu0 %v1509_v60 }
 0x24a   :  { %v1548_v28 = vpop.permute.xlu1 %1547 }
 0x24c   :  { %1733 = vmatmul.mubr.f32.gmra.mrb[16].mxu0 %v1508_v0 }
 0x24d   :  { %1738 = vmatprep.mubr.f32.mxu0 %v1511_v54  ;;  %v1573_v54 = vpop.permute.xlu0 %1572 }
 0x24e   :  { %v1558_v39 = vpop.permute.xlu1 %1557 }
 0x250   :  { %1739 = vmatmul.mubr.f32.gmra.mrb[18].mxu0 %v1510_v7 }
 0x251   :  { %1744 = vmatprep.mubr.f32.mxu0 %v1513_v4 }
 0x252   :  { %v1568_v63 = vpop.permute.xlu1 %1567 }
 0x254   :  { %1745 = vmatmul.mubr.f32.gmra.mrb[20].mxu0 %v1512_v15 }
 0x255   :  { %1750 = vmatprep.mubr.f32.mxu0 %v1515_v41 }
 0x256   :  { %v1578_v15 = vpop.permute.xlu1 %1577 }
 0x258   :  { %1751 = vmatmul.mubr.f32.gmra.mrb[22].mxu0 %v1514_v29 }
 0x259   :  { %1756 = vmatprep.mubr.f32.mxu0 %v1517_v34 }
 0x25c   :  { %1757 = vmatmul.mubr.f32.gmra.mrb[24].mxu0 %v1516_v18 }
 0x25d   :  { %1762 = vmatprep.mubr.f32.mxu0 %v1519_v62 }
 0x260   :  { %1763 = vmatmul.mubr.f32.gmra.mrb[26].mxu0 %v1518_v59 }
 0x261   :  { %1768 = vmatprep.mubr.f32.mxu0 %v1521_v40 }
 0x264   :  { %1769 = vmatmul.mubr.f32.gmra.mrb[28].mxu0 %v1520_v22 }
 0x265   :  { %1774 = vmatprep.mubr.f32.mxu0 %v1523_v35 }
 0x268   :  { %1775 = vmatmul.mubr.f32.gmra.mrb[30].mxu0 %v1522_v20 }
 0x2ff   :  { %v1686_v51 = vpop.f32.mrb[0].mxu0 }
 0x300   :  { %v1688_v48 = vpop.f32.mrb[1].mxu0  ;;  %v1687_v2 = vadd.f32 %v1686_v51, %v1543_v11 }
 0x301   :  { %v1689_v58 = vadd.f32 %v1688_v48, %v1543_v11  ;;  %v1583_v48 = vpop.permute.xlu0 %1582 }
 0x302   :  { %v1781_v23 = vmax.f32 %v1687_v2, 0.0  ;;  %v1588_v2 = vpop.permute.xlu1 %1587 }
 0x303   :  { %v1692_v50 = vpop.f32.mrb[2].mxu0  ;;  %v1782_v14 = vmax.f32 %v1689_v58, 0.0 }
 0x304   :  { %v1693_v61 = vadd.f32 %v1692_v50, %v1548_v28  ;;  %v1694_v27 = vpop.f32.mrb[3].mxu0 }
 0x305   :  { %v1695_v52 = vadd.f32 %v1694_v27, %v1548_v28 }
 0x306   :  { %v1783_v19 = vmax.f32 %v1693_v61, 0.0 }
 0x307   :  { %v1784_v32 = vmax.f32 %v1695_v52, 0.0  ;;  %v1698_v17 = vpop.f32.mrb[4].mxu0 }
 0x308   :  { %v1700_v56 = vpop.f32.mrb[5].mxu0  ;;  %v1992_v8 = vpack.c.bf16 %v1783_v19, %v1781_v23  ;;  %v1699_v57 = vadd.f32 %v1698_v17, %v1553_v47 }
 0x309   :  { %v1990_v38 = vpack.c.bf16 %v1784_v32, %v1782_v14  ;;  %v1701_v16 = vadd.f32 %v1700_v56, %v1553_v47  ;;  %v1593_v47 = vpop.permute.xlu0 %1592 }
 0x30a   :  { %v1785_v3 = vmax.f32 %v1699_v57, 0.0 }
 0x30b   :  { %v1704_v43 = vpop.f32.mrb[6].mxu0  ;;  %1991 = vmatprep.subr.bf16.mxu1 %v1990_v38  ;;  %v1786_v36 = vmax.f32 %v1701_v16, 0.0  ;;  %v1598_v16 = vpop.permute.xlu1 %1597 }
 0x30c   :  { %v1705_v46 = vadd.f32 %v1704_v43, %v1558_v39  ;;  %v1706_v49 = vpop.f32.mrb[7].mxu0  ;;  %1993 = vmatpush1.bf16.msra.mxu1 %v1992_v8 }
 0x30d   :  { %v1707_v1 = vadd.f32 %v1706_v49, %v1558_v39 }
 0x30e   :  { %v1787_v6 = vmax.f32 %v1705_v46, 0.0 }
 0x30f   :  { %v1788_v10 = vmax.f32 %v1707_v1, 0.0  ;;  %v1710_v9 = vpop.f32.mrb[8].mxu0 }
 0x310   :  { %v1996_v13 = vpack.c.bf16 %v1787_v6, %v1785_v3  ;;  %v1712_v12 = vpop.f32.mrb[9].mxu0  ;;  %v1711_v30 = vadd.f32 %v1710_v9, %v1563_v53 }
 0x311   :  { %v1994_v26 = vpack.c.bf16 %v1788_v10, %v1786_v36  ;;  %v1713_v25 = vadd.f32 %v1712_v12, %v1563_v53  ;;  %v1603_v53 = vpop.permute.xlu0 %1602 }
 0x312   :  { %v1789_v33 = vmax.f32 %v1711_v30, 0.0 }
 0x313   :  { %v1716_v24 = vpop.f32.mrb[10].mxu0  ;;  %1995 = vmatprep.subr.bf16.mxu1 %v1994_v26  ;;  %v1790_v5 = vmax.f32 %v1713_v25, 0.0 }
 0x314   :  { %v1717_v42 = vadd.f32 %v1716_v24, %v1568_v63  ;;  %v1718_v31 = vpop.f32.mrb[11].mxu0  ;;  %1997 = vmatpush1.bf16.msra.mxu1 %v1996_v13 }
 0x315   :  { %v1719_v44 = vadd.f32 %v1718_v31, %v1568_v63  ;;  %v1608_v63 = vpop.permute.xlu1 %1607 }
 0x316   :  { %v1791_v21 = vmax.f32 %v1717_v42, 0.0 }
 0x317   :  { %v1792_v37 = vmax.f32 %v1719_v44, 0.0  ;;  %v1722_v55 = vpop.f32.mrb[12].mxu0 }
 0x318   :  { %v2000_v60 = vpack.c.bf16 %v1791_v21, %v1789_v33  ;;  %v1724_v0 = vpop.f32.mrb[13].mxu0  ;;  %v1723_v4 = vadd.f32 %v1722_v55, %v1573_v54 }
 0x319   :  { %v1998_v7 = vpack.c.bf16 %v1792_v37, %v1790_v5  ;;  %v1725_v41 = vadd.f32 %v1724_v0, %v1573_v54  ;;  %v1613_v54 = vpop.permute.xlu0 %1612 }
 0x31a   :  { %v1793_v59 = vmax.f32 %v1723_v4, 0.0 }
 0x31b   :  { %v1728_v29 = vpop.f32.mrb[14].mxu0  ;;  %1999 = vmatprep.subr.bf16.mxu1 %v1998_v7  ;;  %v1794_v22 = vmax.f32 %v1725_v41, 0.0 }
 0x31c   :  { %v1729_v34 = vadd.f32 %v1728_v29, %v1578_v15  ;;  %v1730_v18 = vpop.f32.mrb[15].mxu0  ;;  %2001 = vmatpush1.bf16.msra.mxu1 %v2000_v60 }
 0x31d   :  { %v1731_v62 = vadd.f32 %v1730_v18, %v1578_v15  ;;  %v1618_v15 = vpop.permute.xlu1 %1617 }
 0x31e   :  { %v1795_v40 = vmax.f32 %v1729_v34, 0.0 }
 0x31f   :  { %v1796_v35 = vmax.f32 %v1731_v62, 0.0  ;;  %v1734_v20 = vpop.f32.mrb[16].mxu0 }
 0x320   :  { %v2004_v45 = vpack.c.bf16 %v1795_v40, %v1793_v59  ;;  %v1736_v51 = vpop.f32.mrb[17].mxu0  ;;  %v1735_v28 = vadd.f32 %v1734_v20, %v1583_v48 }
 0x321   :  { %v2002_v11 = vpack.c.bf16 %v1796_v35, %v1794_v22  ;;  %v1737_v58 = vadd.f32 %v1736_v51, %v1583_v48  ;;  %v1813_v51 = vld [vmem:[%s3454_s7] sm:$0x1]  ;;  %v2101_v48 = vmov 1966171168   ;;  %s2074_s7 = scalar_lea.vmem %s1917_s29, 32 }
 0x322   :  { %v1797_v23 = vmax.f32 %v1735_v28, 0.0  ;;  %v1815_v28 = vstv %s3455_s8  ;;  %p2075_p0 = scmp.ne.s32.totalorder %s1917_s29, %s2074_s7  ;;  %p2080_p2 = scmp.lt.s32.totalorder %s2074_s7, %s2074_s7 }
 0x323   :  { %v1740_v50 = vpop.f32.mrb[18].mxu0  ;;  %2003 = vmatprep.subr.bf16.mxu1 %v2002_v11  ;;  %v1798_v14 = vmax.f32 %v1737_v58, 0.0  ;;  %v1891_v11 = vunpack.c.l.s4 %v2101_v48 }
 0x324   :  { %v1741_v61 = vadd.f32 %v1740_v50, %v1588_v2  ;;  %v1742_v27 = vpop.f32.mrb[19].mxu0  ;;  %2005 = vmatpush1.bf16.msra.mxu1 %v2004_v45  ;;  %p2081_p3 = por %p2080_p2, %p2079_p1 }
 0x325   :  { %v1743_v52 = vadd.f32 %v1742_v27, %v1588_v2  ;;  %v1892_v2 = vunpack.c.0.s8 %v1891_v11 }
 0x326   :  { %v1799_v19 = vmax.f32 %v1741_v61, 0.0  ;;  %p2082_p4 = pnand %p2081_p3, %p2075_p0 }
 0x327   :  { %v1800_v32 = vmax.f32 %v1743_v52, 0.0  ;;  %v1746_v17 = vpop.f32.mrb[20].mxu0  ;;  %v3589_v52 = vld [vmem:[#allocation31_spill] sm:$0xff] }
 0x328   :  { %v2008_v56 = vpack.c.bf16 %v1799_v19, %v1797_v23  ;;  %v1748_v8 = vpop.f32.mrb[21].mxu0  ;;  %v1747_v57 = vadd.f32 %v1746_v17, %v1593_v47  ;;  %v1895_v23 = vsub.s32 %v1892_v2, %v3589_v52 }
 0x329   :  { %v2006_v38 = vpack.c.bf16 %v1800_v32, %v1798_v14  ;;  %v1749_v39 = vadd.f32 %v1748_v8, %v1593_v47  ;;  %v3590_v32 = vlaneseq }
 0x32a   :  { %v1801_v3 = vmax.f32 %v1747_v57, 0.0 }
 0x32b   :  { %v1752_v43 = vpop.f32.mrb[22].mxu0  ;;  %2007 = vmatprep.subr.bf16.mxu1 %v2006_v38  ;;  %v1802_v36 = vmax.f32 %v1749_v39, 0.0  ;;  %vm1907_vm0 = vcmp.lt.s32.totalorder %v3590_v32, 256 }
 0x32c   :  { %v1753_v46 = vadd.f32 %v1752_v43, %v1598_v16  ;;  %v1754_v49 = vpop.f32.mrb[23].mxu0  ;;  %2009 = vmatpush1.bf16.msra.mxu1 %v2008_v56 }
 0x32d   :  { %v1755_v1 = vadd.f32 %v1754_v49, %v1598_v16 }
 0x32e   :  { %v1803_v6 = vmax.f32 %v1753_v46, 0.0 }
 0x32f   :  { %v1804_v10 = vmax.f32 %v1755_v1, 0.0  ;;  %v1758_v9 = vpop.f32.mrb[24].mxu0 }
 0x330   :  { %v2012_v13 = vpack.c.bf16 %v1803_v6, %v1801_v3  ;;  %v1760_v12 = vpop.f32.mrb[25].mxu0  ;;  %v1759_v30 = vadd.f32 %v1758_v9, %v1603_v53 }
 0x331   :  { %v2010_v26 = vpack.c.bf16 %v1804_v10, %v1802_v36  ;;  %v1761_v25 = vadd.f32 %v1760_v12, %v1603_v53 }
 0x332   :  { %v1805_v33 = vmax.f32 %v1759_v30, 0.0 }
 0x333   :  { %v1764_v24 = vpop.f32.mrb[26].mxu0  ;;  %2011 = vmatprep.subr.bf16.mxu1 %v2010_v26  ;;  %v1806_v5 = vmax.f32 %v1761_v25, 0.0 }
 0x334   :  { %v1765_v42 = vadd.f32 %v1764_v24, %v1608_v63  ;;  %v1766_v31 = vpop.f32.mrb[27].mxu0  ;;  %2013 = vmatpush1.bf16.msra.mxu1 %v2012_v13 }
 0x335   :  { %v1767_v44 = vadd.f32 %v1766_v31, %v1608_v63 }
 0x336   :  { %v1807_v21 = vmax.f32 %v1765_v42, 0.0 }
 0x337   :  { %v1808_v37 = vmax.f32 %v1767_v44, 0.0  ;;  %v1770_v55 = vpop.f32.mrb[28].mxu0 }
 0x338   :  { %v2016_v60 = vpack.c.bf16 %v1807_v21, %v1805_v33  ;;  %v1772_v0 = vpop.f32.mrb[29].mxu0  ;;  %v1771_v4 = vadd.f32 %v1770_v55, %v1613_v54 }
 0x339   :  { %v2014_v7 = vpack.c.bf16 %v1808_v37, %v1806_v5  ;;  %v1773_v41 = vadd.f32 %v1772_v0, %v1613_v54 }
 0x33a   :  { %v1809_v59 = vmax.f32 %v1771_v4, 0.0 }
 0x33b   :  { %v1776_v29 = vpop.f32.mrb[30].mxu0  ;;  %2015 = vmatprep.subr.bf16.mxu1 %v2014_v7  ;;  %v1810_v22 = vmax.f32 %v1773_v41, 0.0 }
 0x33c   :  { %v1777_v34 = vadd.f32 %v1776_v29, %v1618_v15  ;;  %v1778_v18 = vpop.f32.mrb[31].mxu0  ;;  %2017 = vmatpush1.bf16.msra.mxu1 %v2016_v60 }
 0x33d   :  { %v1779_v62 = vadd.f32 %v1778_v18, %v1618_v15 }
 0x33e   :  { %v1811_v40 = vmax.f32 %v1777_v34, 0.0 }
 0x33f   :  { %v1812_v35 = vmax.f32 %v1779_v62, 0.0 }
 0x340   :  { %v2020_v20 = vpack.c.bf16 %v1811_v40, %v1809_v59 }
 0x341   :  { %v2018_v45 = vpack.c.bf16 %v1812_v35, %v1810_v22 }
 0x343   :  { %2019 = vmatprep.subr.bf16.mxu1 %v2018_v45 }
 0x344   :  { %2021 = vmatpush1.bf16.msra.mxu1 %v2020_v20 }
 0x347   :  { %1881 = vmatmul.mubr.f32.vlgmr.msra.gmra.mrb[0].mxu1 %v1813_v51 }
 0x41a   :  { %v1882_v58 = vpop.f32.mrb[0].mxu1 }
 0x41b   :  { %v1883_v50 = vadd.f32 %v1882_v58, %v1815_v28  ;;  %v1884_v61 = vpop.f32.mrb[1].mxu1 }
 0x41c   :  { %v1885_v27 = vadd.f32 %v1884_v61, %v1815_v28 }
 0x41e   :  { %v1889_v19 = vcombine.low %v1883_v50, %v1885_v27 }
 0x420   :  { %v1896_v14 = vrot.slane %v1889_v19, %v1895_v23 }
 0x422   :  { %v1903_v17 = vrot.slane %v1896_v14, %v1895_v23 }
 0x424   :  { %1909 = vst.msk [vmem:[#allocation3] sm:$0x3] %vm1907_vm0, %v1903_v17 }
 0x425   :  { %2085 = shalt.err (!%p2082_p4)
}
 0x426   :  { %s2086_s10 = scalar_lea.hbm %s3456_s9, 32 }
 0x427   :  { %p2087_p5 = scmp.ne.s32.totalorder %s3456_s9, %s2086_s10  ;;  %p2090_p6 = scmp.lt.u32.totalorder %s2086_s10, %s3456_s9 }
 0x429   :  { %p2092_p7 = pnand %p2090_p6, %p2087_p5 }
 0x42b   :  { %2095 = shalt.err (!%p2092_p7)
}
 0x42c   :  { %1919 = dma.vmem_to_hbm [thread:$0]  %s1917_s29, 32, %s3456_s9, [#allocation4]  }
 0x42d   :  { %2096 = dma.done.wait [#allocation4], 32  }
 0x42e   :  { %2097 = vsyncadd [#allocation4], 4294967264 }
 0x42f   :  { %1923 = vsyncpa [#allocation4], 1 }

</bundles_post_ra>
